<compile_context>
chip_gen: v7x
topology: tpu7x:2x2x1
jax: 0.10.0
libtpu: 0.0.40
codegen_flags: <defaults>
</compile_context>

<pallas_src>
import functools

import jax
import jax.numpy as jnp
from jax import lax
from jax.experimental import pallas as pl
from jax.experimental.pallas import tpu as pltpu


# --------------------------- model configuration ---------------------------

VOCAB = 100
VOCAB_PAD = 128            # pad vocab to a full lane group for the one-hot matmul
MAX_POS = 16
HIDDEN = 32
N_HEADS = 2
HEAD_DIM = HIDDEN // N_HEADS
INTERMEDIATE = 64
N_LAYERS = 2
NUM_CLASSES = 4
LN_EPS = 1e-12

# Packed "small vector" slab layout: one VMEM operand for every bias / LN vector.
VEC_W = 3 * HIDDEN                              # 96 lanes (widest row = fused QKV bias)
ROW_EMB_G, ROW_EMB_B, ROW_POOL_B, ROW_CLS_B = 0, 1, 2, 3
ROWS_GLOBAL = 4
(OFF_BQKV, OFF_BO, OFF_LN1G, OFF_LN1B,
 OFF_BI, OFF_BO2, OFF_LN2G, OFF_LN2B) = range(8)
ROWS_PER_LAYER = 8
VEC_ROWS = ROWS_GLOBAL + N_LAYERS * ROWS_PER_LAYER   # 20


# ------------------------------ kernel helpers ------------------------------

def _layernorm(x, g, b, eps):
    mu = jnp.mean(x, axis=-1, keepdims=True)
    xc = x - mu
    var = jnp.mean(xc * xc, axis=-1, keepdims=True)
    return xc * lax.rsqrt(var + eps) * g + b


def _gelu_exact(x):
    # exact (erf-based) GELU matching HF BERT's "gelu"; erf via A&S 7.1.26
    # (|abs error| < 1.5e-7), built only from exp/abs/where for robust lowering.
    z = x * jnp.float32(0.7071067811865476)
    az = jnp.abs(z)
    t = 1.0 / (1.0 + jnp.float32(0.3275911) * az)
    poly = ((((jnp.float32(1.061405429) * t + jnp.float32(-1.453152027)) * t
              + jnp.float32(1.421413741)) * t + jnp.float32(-0.284496736)) * t
            + jnp.float32(0.254829592)) * t
    erf_az = 1.0 - poly * jnp.exp(-az * az)
    erf_z = jnp.where(z >= 0, erf_az, -erf_az)
    return 0.5 * x * (1.0 + erf_z)


# ------------------------------ fused kernel -------------------------------

def _hanet_kernel(
    ids_ref, mask_ref, wemb_ref, postype_ref,
    wqkv_ref, wo_ref, wi_ref, wo2_ref, headw_ref, vec_ref,
    out_ref, ctx_ref,
    *, B, S, n_layers, n_heads, head_dim, hidden, inter, num_classes,
    vocab_pad, eps,
):
    f32 = jnp.float32
    BS = B * S

    def vrow(r, w):                      # (1, w) slice of the packed vector slab
        return vec_ref[r:r + 1, 0:w]

    def mm(x, w):                        # bf16 MXU matmul, f32 accumulation
        return jnp.dot(x.astype(w.dtype), w, preferred_element_type=f32)

    # ---- fused embedding lookup: one-hot (BS,128) @ (128,H) + pos/type, LN ----
    ids = ids_ref[...]                                            # (BS, 1) int32
    one_hot = (lax.broadcasted_iota(jnp.int32, (BS, vocab_pad), 1) == ids)
    wemb = wemb_ref[...]                                          # (128, H) bf16
    word = jnp.dot(one_hot.astype(wemb.dtype), wemb, preferred_element_type=f32)
    pos_type = postype_ref[0:S, :]                                # (S, H) f32
    h = word + jnp.concatenate([pos_type] * B, axis=0)            # (BS, H)
    h = _layernorm(h, vrow(ROW_EMB_G, hidden), vrow(ROW_EMB_B, hidden), eps)

    # Precomputed additive mask over the flattened token axis (block-diagonal
    # per sequence + key padding), shape (BS, BS).
    add_mask = mask_ref[...]

    scale = f32(1.0 / float(head_dim) ** 0.5)

    for l in range(n_layers):
        base = ROWS_GLOBAL + l * ROWS_PER_LAYER

        # Packed QKV projection: (BS, H) @ (H, 3H)
        qkv = mm(h, wqkv_ref[l]) + vrow(base + OFF_BQKV, 3 * hidden)

        # Per-head attention over the flattened tokens; cross-sequence and
        # padded keys are killed by add_mask. Context written straight into a
        # VMEM scratch (no concatenate).
        for hd in range(n_heads):
            lo = hd * head_dim
            q = qkv[:, lo:lo + head_dim]
            k = qkv[:, hidden + lo:hidden + lo + head_dim]
            v = qkv[:, 2 * hidden + lo:2 * hidden + lo + head_dim]
            s = lax.dot_general(
                q.astype(jnp.bfloat16), k.astype(jnp.bfloat16),
                dimension_numbers=(((1,), (1,)), ((), ())),
                preferred_element_type=f32)
            s = s * scale + add_mask
            # No max-subtraction: masked logits are -1e9 (exp underflows to 0),
            # unmasked logits are O(1) in f32, so exp cannot overflow.
            p = jnp.exp(s)
            p = p * pl.reciprocal(jnp.sum(p, axis=-1, keepdims=True), approx=True)
            ctx_ref[:, lo:lo + head_dim] = jnp.dot(
                p.astype(jnp.bfloat16), v.astype(jnp.bfloat16),
                preferred_element_type=f32)

        # Attention output projection + residual + LN1.
        attn = mm(ctx_ref[...], wo_ref[l]) + vrow(base + OFF_BO, hidden)
        h = _layernorm(attn + h, vrow(base + OFF_LN1G, hidden),
                       vrow(base + OFF_LN1B, hidden), eps)

        # FFN + residual + LN2.
        ff = _gelu_exact(mm(h, wi_ref[l]) + vrow(base + OFF_BI, inter))
        ff = mm(ff, wo2_ref[l]) + vrow(base + OFF_BO2, hidden)
        h = _layernorm(ff + h, vrow(base + OFF_LN2G, hidden),
                       vrow(base + OFF_LN2B, hidden), eps)

    # Pooler (CLS token of each sequence, dense + tanh) and classifier.
    cls_rows = jnp.concatenate([h[b * S:b * S + 1, :] for b in range(B)], axis=0)  # (B, H)
    headw = headw_ref[...]                                         # (H, H+C) bf16
    pooled = jnp.tanh(
        jnp.dot(cls_rows.astype(headw.dtype), headw[:, 0:hidden],
                preferred_element_type=f32) + vrow(ROW_POOL_B, hidden))
    logits = (jnp.dot(pooled.astype(headw.dtype),
                      headw[:, hidden:hidden + num_classes],
                      preferred_element_type=f32) + vrow(ROW_CLS_B, num_classes))

    # Single 2-D output slab: [pooled | logits].
    out_ref[...] = jnp.concatenate([pooled, logits], axis=1).astype(out_ref.dtype)


def hanet_fused_call(ids, add_mask, st, B, S):
    """Single pallas_call, one grid step over the whole batch."""
    BS = B * S
    kernel = functools.partial(
        _hanet_kernel,
        B=B, S=S, n_layers=N_LAYERS, n_heads=N_HEADS, head_dim=HEAD_DIM,
        hidden=HIDDEN, inter=INTERMEDIATE, num_classes=NUM_CLASSES,
        vocab_pad=VOCAB_PAD, eps=LN_EPS)

    def full(shape):
        nd = len(shape)
        return pl.BlockSpec(shape, lambda i: (0,) * nd)

    out = pl.pallas_call(
        kernel,
        out_shape=jax.ShapeDtypeStruct((B, HIDDEN + NUM_CLASSES), jnp.float32),
        grid=(1,),
        in_specs=[
            full((BS, 1)),                                   # token ids
            full((BS, BS)),                                  # additive attention mask
            full((VOCAB_PAD, HIDDEN)),                       # word embeddings (bf16)
            full((MAX_POS, HIDDEN)),                         # pos + type embeddings
            full((N_LAYERS, HIDDEN, 3 * HIDDEN)),            # packed QKV weights
            full((N_LAYERS, HIDDEN, HIDDEN)),                # attn output weights
            full((N_LAYERS, HIDDEN, INTERMEDIATE)),          # FFN in weights
            full((N_LAYERS, INTERMEDIATE, HIDDEN)),          # FFN out weights
            full((HIDDEN, HIDDEN + NUM_CLASSES)),            # [pool_w | cls_w]
            full((VEC_ROWS, VEC_W)),                         # all biases / LN vectors
        ],
        out_specs=full((B, HIDDEN + NUM_CLASSES)),
        scratch_shapes=[pltpu.VMEM((BS, HIDDEN), jnp.float32)],   # per-head ctx slab
        compiler_params=pltpu.CompilerParams(dimension_semantics=("arbitrary",)),
    )(ids, add_mask, st["wemb"], st["pos_type"], st["wqkv"], st["wo"],
      st["wi"], st["wo2"], st["headw"], st["vec"])

    pooled = out[:, :HIDDEN]
    logits = out[:, HIDDEN:]
    return logits, pooled


# ------------------------------ parameters ---------------------------------

def init_params(key):
    def nrm(key, shape):
        return jax.random.normal(key, shape, jnp.float32) * 0.02

    keys = iter(jax.random.split(key, 64))
    params = {
        "word_emb": nrm(next(keys), (VOCAB, HIDDEN)),
        "pos_emb": nrm(next(keys), (MAX_POS, HIDDEN)),
        "type_emb": nrm(next(keys), (2, HIDDEN)),
        "emb_ln_g": jnp.ones((HIDDEN,), jnp.float32),
        "emb_ln_b": jnp.zeros((HIDDEN,), jnp.float32),
        "layers": [],
        "pool_w": nrm(next(keys), (HIDDEN, HIDDEN)),
        "pool_b": jnp.zeros((HIDDEN,), jnp.float32),
        "cls_w": nrm(next(keys), (HIDDEN, NUM_CLASSES)),
        "cls_b": jnp.zeros((NUM_CLASSES,), jnp.float32),
    }
    for _ in range(N_LAYERS):
        params["layers"].append({
            "wq": nrm(next(keys), (HIDDEN, HIDDEN)), "bq": jnp.zeros((HIDDEN,), jnp.float32),
            "wk": nrm(next(keys), (HIDDEN, HIDDEN)), "bk": jnp.zeros((HIDDEN,), jnp.float32),
            "wv": nrm(next(keys), (HIDDEN, HIDDEN)), "bv": jnp.zeros((HIDDEN,), jnp.float32),
            "wo": nrm(next(keys), (HIDDEN, HIDDEN)), "bo": jnp.zeros((HIDDEN,), jnp.float32),
            "ln1_g": jnp.ones((HIDDEN,), jnp.float32), "ln1_b": jnp.zeros((HIDDEN,), jnp.float32),
            "wi": nrm(next(keys), (HIDDEN, INTERMEDIATE)), "bi": jnp.zeros((INTERMEDIATE,), jnp.float32),
            "wo2": nrm(next(keys), (INTERMEDIATE, HIDDEN)), "bo2": jnp.zeros((HIDDEN,), jnp.float32),
            "ln2_g": jnp.ones((HIDDEN,), jnp.float32), "ln2_b": jnp.zeros((HIDDEN,), jnp.float32),
        })
    return params


def stack_params(params):
    """One-time packing of parameters into the kernel's resident VMEM operands."""
    L = params["layers"]

    def pad_row(v):
        return jnp.pad(v, (0, VEC_W - v.shape[0]))

    rows = [pad_row(params["emb_ln_g"]), pad_row(params["emb_ln_b"]),
            pad_row(params["pool_b"]), pad_row(params["cls_b"])]
    for l in L:
        rows += [jnp.concatenate([l["bq"], l["bk"], l["bv"]]),
                 pad_row(l["bo"]), pad_row(l["ln1_g"]), pad_row(l["ln1_b"]),
                 pad_row(l["bi"]), pad_row(l["bo2"]),
                 pad_row(l["ln2_g"]), pad_row(l["ln2_b"])]
    vec = jnp.stack(rows).astype(jnp.float32)                      # (20, 96)

    return {
        "vec": vec,
        "wemb": jnp.pad(params["word_emb"],
                        ((0, VOCAB_PAD - VOCAB), (0, 0))).astype(jnp.bfloat16),
        "pos_type": (params["pos_emb"]
                     + params["type_emb"][0][None, :]).astype(jnp.float32),
        "wqkv": jnp.stack([jnp.concatenate([l["wq"], l["wk"], l["wv"]], axis=1)
                           for l in L]).astype(jnp.bfloat16),
        "wo": jnp.stack([l["wo"] for l in L]).astype(jnp.bfloat16),
        "wi": jnp.stack([l["wi"] for l in L]).astype(jnp.bfloat16),
        "wo2": jnp.stack([l["wo2"] for l in L]).astype(jnp.bfloat16),
        "headw": jnp.concatenate([params["pool_w"], params["cls_w"]],
                                 axis=1).astype(jnp.bfloat16),
    }


# ------------------------------ forward pass -------------------------------

def hanet_forward(stacked, input_ids, attention_mask):
    """Returns (logits, pooled) — matches HANetSimple.forward semantics."""
    B, S = input_ids.shape
    BS = B * S

    ids = input_ids.reshape(BS, 1).astype(jnp.int32)

    # Tiny (BS, BS) additive mask built in plain JAX: block-diagonal per sequence
    # (no cross-sequence attention in the flattened layout) AND key-padding mask.
    batch_of = jnp.arange(BS, dtype=jnp.int32) // S
    same_seq = batch_of[:, None] == batch_of[None, :]
    key_ok = attention_mask.reshape(1, BS) > 0
    add_mask = jnp.where(same_seq & key_ok, 0.0, -1e9).astype(jnp.float32)

    return hanet_fused_call(ids, add_mask, stacked, B, S)


# ---------------------------------- main -----------------------------------

if __name__ == "__main__":
    key = jax.random.PRNGKey(0)
    pkey, ikey = jax.random.split(key)

    params = init_params(pkey)
    stacked = stack_params(params)          # packed once, outside the jitted fwd

    B, S = 2, 8
    input_ids = jax.random.randint(ikey, (B, S), 0, VOCAB, dtype=jnp.int32)
    attention_mask = jnp.array(
        [[1] * S, [1] * (S - 2) + [0, 0]], dtype=jnp.int32
    )  # second sequence is padded

    fwd = jax.jit(hanet_forward)
    logits, pooled = fwd(stacked, input_ids, attention_mask)
    jax.block_until_ready((logits, pooled))

    assert logits.shape == (B, NUM_CLASSES)
    assert pooled.shape == (B, HIDDEN)
    assert bool(jnp.all(jnp.isfinite(logits))) and bool(jnp.all(jnp.isfinite(pooled)))
    print("KERNEL_OK")
</pallas_src>

<mosaic_0001>
module attributes {stable_mosaic.version = 11 : i64} {
  func.func @_hanet_kernel(%arg0: i32, %arg1: memref<16x1xi32, #tpu.memory_space<vmem>>, %arg2: memref<16x16xf32, #tpu.memory_space<vmem>>, %arg3: memref<128x32xbf16, #tpu.memory_space<vmem>>, %arg4: memref<16x32xf32, #tpu.memory_space<vmem>>, %arg5: memref<2x32x96xbf16, #tpu.memory_space<vmem>>, %arg6: memref<2x32x32xbf16, #tpu.memory_space<vmem>>, %arg7: memref<2x32x64xbf16, #tpu.memory_space<vmem>>, %arg8: memref<2x64x32xbf16, #tpu.memory_space<vmem>>, %arg9: memref<32x36xbf16, #tpu.memory_space<vmem>>, %arg10: memref<20x96xf32, #tpu.memory_space<vmem>>, %arg11: memref<2x36xf32, #tpu.memory_space<vmem>>, %arg12: memref<16x32xf32, #tpu.memory_space<vmem>>) attributes {dimension_semantics = [#tpu.dimension_semantics<arbitrary>], iteration_bounds = array<i64: 1>, scalar_prefetch = 0 : i64, scratch_operands = 1 : i64, tpu.core_type = #tpu.core_type<tc>, window_params = [{pipeline_mode = #tpu.pipeline_mode<synchronous>, transform_indices = @transform_0, window_bounds = array<i64: 16, 1>}, {pipeline_mode = #tpu.pipeline_mode<synchronous>, transform_indices = @transform_1, window_bounds = array<i64: 16, 16>}, {pipeline_mode = #tpu.pipeline_mode<synchronous>, transform_indices = @transform_2, window_bounds = array<i64: 128, 32>}, {pipeline_mode = #tpu.pipeline_mode<synchronous>, transform_indices = @transform_3, window_bounds = array<i64: 16, 32>}, {pipeline_mode = #tpu.pipeline_mode<synchronous>, transform_indices = @transform_4, window_bounds = array<i64: 2, 32, 96>}, {pipeline_mode = #tpu.pipeline_mode<synchronous>, transform_indices = @transform_5, window_bounds = array<i64: 2, 32, 32>}, {pipeline_mode = #tpu.pipeline_mode<synchronous>, transform_indices = @transform_6, window_bounds = array<i64: 2, 32, 64>}, {pipeline_mode = #tpu.pipeline_mode<synchronous>, transform_indices = @transform_7, window_bounds = array<i64: 2, 64, 32>}, {pipeline_mode = #tpu.pipeline_mode<synchronous>, transform_indices = @transform_8, window_bounds = array<i64: 32, 36>}, {pipeline_mode = #tpu.pipeline_mode<synchronous>, transform_indices = @transform_9, window_bounds = array<i64: 20, 96>}, {pipeline_mode = #tpu.pipeline_mode<synchronous>, transform_indices = @transform_10, window_bounds = array<i64: 2, 36>}]} {
    %c0 = arith.constant 0 : index
    %c0_0 = arith.constant 0 : index
    %0 = vector.load %arg1[%c0, %c0_0] : memref<16x1xi32, #tpu.memory_space<vmem>>, vector<16x1xi32>
    %1 = tpu.iota {dimensions = array<i32: 1>} : vector<16x128xi32>
    %2 = vector.broadcast %0 : vector<16x1xi32> to vector<16x128xi32>
    %3 = arith.cmpi eq, %1, %2 : vector<16x128xi32>
    %c0_1 = arith.constant 0 : index
    %c0_2 = arith.constant 0 : index
    %4 = vector.load %arg3[%c0_1, %c0_2] : memref<128x32xbf16, #tpu.memory_space<vmem>>, vector<128x32xbf16>
    %5 = arith.extui %3 : vector<16x128xi1> to vector<16x128xi32>
    %6 = arith.sitofp %5 : vector<16x128xi32> to vector<16x128xf32>
    %7 = arith.truncf %6 : vector<16x128xf32> to vector<16x128xbf16>
    %cst = arith.constant dense<0.000000e+00> : vector<16x32xf32>
    %8 = tpu.matmul %7, %4, %cst {dimension_numbers = #tpu.dot_dimension_numbers<[1], [0], [0], [1], [0, 0, 1, 1], [], []>} : vector<16x128xbf16>, vector<128x32xbf16>, vector<16x32xf32> -> vector<16x32xf32>
    %c0_3 = arith.constant 0 : index
    %c0_4 = arith.constant 0 : index
    %9 = vector.load %arg4[%c0_3, %c0_4] : memref<16x32xf32, #tpu.memory_space<vmem>>, vector<8x32xf32>
    %10 = tpu.concatenate %9, %9 in 0 : vector<8x32xf32>, vector<8x32xf32> -> vector<16x32xf32>
    %11 = arith.addf %8, %10 : vector<16x32xf32>
    %c0_5 = arith.constant 0 : index
    %c0_6 = arith.constant 0 : index
    %12 = vector.load %arg10[%c0_5, %c0_6] : memref<20x96xf32, #tpu.memory_space<vmem>>, vector<1x32xf32>
    %c1 = arith.constant 1 : index
    %c0_7 = arith.constant 0 : index
    %13 = vector.load %arg10[%c1, %c0_7] : memref<20x96xf32, #tpu.memory_space<vmem>>, vector<1x32xf32>
    %cst_8 = arith.constant dense<0.000000e+00> : vector<16xf32>
    %14 = vector.multi_reduction <add>, %11, %cst_8 [1] : vector<16x32xf32> to vector<16xf32>
    %15 = vector.shape_cast %14 : vector<16xf32> to vector<16x1xf32>
    %cst_9 = arith.constant 3.200000e+01 : f32
    %16 = vector.broadcast %cst_9 : f32 to vector<16x1xf32>
    %17 = arith.divf %15, %16 : vector<16x1xf32>
    %18 = vector.broadcast %17 : vector<16x1xf32> to vector<16x32xf32>
    %19 = arith.subf %11, %18 : vector<16x32xf32>
    %20 = arith.mulf %19, %19 : vector<16x32xf32>
    %cst_10 = arith.constant dense<0.000000e+00> : vector<16xf32>
    %21 = vector.multi_reduction <add>, %20, %cst_10 [1] : vector<16x32xf32> to vector<16xf32>
    %22 = vector.shape_cast %21 : vector<16xf32> to vector<16x1xf32>
    %cst_11 = arith.constant 3.200000e+01 : f32
    %23 = vector.broadcast %cst_11 : f32 to vector<16x1xf32>
    %24 = arith.divf %22, %23 : vector<16x1xf32>
    %cst_12 = arith.constant 9.99999996E-13 : f32
    %25 = vector.broadcast %cst_12 : f32 to vector<16x1xf32>
    %26 = arith.addf %24, %25 : vector<16x1xf32>
    %27 = math.rsqrt %26 : vector<16x1xf32>
    %28 = vector.broadcast %27 : vector<16x1xf32> to vector<16x32xf32>
    %29 = arith.mulf %19, %28 : vector<16x32xf32>
    %30 = vector.broadcast %12 : vector<1x32xf32> to vector<16x32xf32>
    %31 = arith.mulf %29, %30 : vector<16x32xf32>
    %32 = vector.broadcast %13 : vector<1x32xf32> to vector<16x32xf32>
    %33 = arith.addf %31, %32 : vector<16x32xf32>
    %c0_13 = arith.constant 0 : index
    %c0_14 = arith.constant 0 : index
    %34 = vector.load %arg2[%c0_13, %c0_14] : memref<16x16xf32, #tpu.memory_space<vmem>>, vector<16x16xf32>
    %c0_15 = arith.constant 0 : index
    %c0_16 = arith.constant 0 : index
    %c0_17 = arith.constant 0 : index
    %35 = vector.load %arg5[%c0_15, %c0_16, %c0_17] : memref<2x32x96xbf16, #tpu.memory_space<vmem>>, vector<1x32x96xbf16>
    %36 = vector.shape_cast %35 : vector<1x32x96xbf16> to vector<32x96xbf16>
    %37 = arith.truncf %33 : vector<16x32xf32> to vector<16x32xbf16>
    %cst_18 = arith.constant dense<0.000000e+00> : vector<16x96xf32>
    %38 = tpu.matmul %37, %36, %cst_18 {dimension_numbers = #tpu.dot_dimension_numbers<[1], [0], [0], [1], [0, 0, 1, 1], [], []>} : vector<16x32xbf16>, vector<32x96xbf16>, vector<16x96xf32> -> vector<16x96xf32>
    %c4 = arith.constant 4 : index
    %c0_19 = arith.constant 0 : index
    %39 = vector.load %arg10[%c4, %c0_19] : memref<20x96xf32, #tpu.memory_space<vmem>>, vector<1x96xf32>
    %40 = vector.broadcast %39 : vector<1x96xf32> to vector<16x96xf32>
    %41 = arith.addf %38, %40 : vector<16x96xf32>
    %42 = vector.extract_strided_slice %41 {offsets = [0, 0], sizes = [16, 16], strides = [1, 1]} : vector<16x96xf32> to vector<16x16xf32>
    %43 = vector.extract_strided_slice %41 {offsets = [0, 32], sizes = [16, 16], strides = [1, 1]} : vector<16x96xf32> to vector<16x16xf32>
    %44 = vector.extract_strided_slice %41 {offsets = [0, 64], sizes = [16, 16], strides = [1, 1]} : vector<16x96xf32> to vector<16x16xf32>
    %45 = arith.truncf %42 : vector<16x16xf32> to vector<16x16xbf16>
    %46 = arith.truncf %43 : vector<16x16xf32> to vector<16x16xbf16>
    %cst_20 = arith.constant dense<0.000000e+00> : vector<16x16xf32>
    %47 = tpu.matmul %45, %46, %cst_20 {dimension_numbers = #tpu.dot_dimension_numbers<[1], [1], [0], [0], [0, 0, 1, 0], [], []>} : vector<16x16xbf16>, vector<16x16xbf16>, vector<16x16xf32> -> vector<16x16xf32>
    %cst_21 = arith.constant 2.500000e-01 : f32
    %48 = vector.broadcast %cst_21 : f32 to vector<16x16xf32>
    %49 = arith.mulf %47, %48 : vector<16x16xf32>
    %50 = arith.addf %49, %34 : vector<16x16xf32>
    %51 = math.exp %50 : vector<16x16xf32>
    %cst_22 = arith.constant dense<0.000000e+00> : vector<16xf32>
    %52 = vector.multi_reduction <add>, %51, %cst_22 [1] : vector<16x16xf32> to vector<16xf32>
    %53 = vector.shape_cast %52 : vector<16xf32> to vector<16x1xf32>
    %54 = tpu.reciprocal %53 {approx = true} : vector<16x1xf32> -> vector<16x1xf32>
    %55 = vector.broadcast %54 : vector<16x1xf32> to vector<16x16xf32>
    %56 = arith.mulf %51, %55 : vector<16x16xf32>
    %57 = arith.truncf %56 : vector<16x16xf32> to vector<16x16xbf16>
    %58 = arith.truncf %44 : vector<16x16xf32> to vector<16x16xbf16>
    %cst_23 = arith.constant dense<0.000000e+00> : vector<16x16xf32>
    %59 = tpu.matmul %57, %58, %cst_23 {dimension_numbers = #tpu.dot_dimension_numbers<[1], [0], [0], [1], [0, 0, 1, 1], [], []>} : vector<16x16xbf16>, vector<16x16xbf16>, vector<16x16xf32> -> vector<16x16xf32>
    %c0_24 = arith.constant 0 : index
    %c0_25 = arith.constant 0 : index
    %60 = vector.load %arg12[%c0_24, %c0_25] : memref<16x32xf32, #tpu.memory_space<vmem>>, vector<16x16xf32>
    tpu.vector_store %arg12[%c0_24, %c0_25], %59 {strides = array<i32>} : memref<16x32xf32, #tpu.memory_space<vmem>>, vector<16x16xf32>,
    %61 = vector.extract_strided_slice %41 {offsets = [0, 16], sizes = [16, 16], strides = [1, 1]} : vector<16x96xf32> to vector<16x16xf32>
    %62 = vector.extract_strided_slice %41 {offsets = [0, 48], sizes = [16, 16], strides = [1, 1]} : vector<16x96xf32> to vector<16x16xf32>
    %63 = vector.extract_strided_slice %41 {offsets = [0, 80], sizes = [16, 16], strides = [1, 1]} : vector<16x96xf32> to vector<16x16xf32>
    %64 = arith.truncf %61 : vector<16x16xf32> to vector<16x16xbf16>
    %65 = arith.truncf %62 : vector<16x16xf32> to vector<16x16xbf16>
    %cst_26 = arith.constant dense<0.000000e+00> : vector<16x16xf32>
    %66 = tpu.matmul %64, %65, %cst_26 {dimension_numbers = #tpu.dot_dimension_numbers<[1], [1], [0], [0], [0, 0, 1, 0], [], []>} : vector<16x16xbf16>, vector<16x16xbf16>, vector<16x16xf32> -> vector<16x16xf32>
    %cst_27 = arith.constant 2.500000e-01 : f32
    %67 = vector.broadcast %cst_27 : f32 to vector<16x16xf32>
    %68 = arith.mulf %66, %67 : vector<16x16xf32>
    %69 = arith.addf %68, %34 : vector<16x16xf32>
    %70 = math.exp %69 : vector<16x16xf32>
    %cst_28 = arith.constant dense<0.000000e+00> : vector<16xf32>
    %71 = vector.multi_reduction <add>, %70, %cst_28 [1] : vector<16x16xf32> to vector<16xf32>
    %72 = vector.shape_cast %71 : vector<16xf32> to vector<16x1xf32>
    %73 = tpu.reciprocal %72 {approx = true} : vector<16x1xf32> -> vector<16x1xf32>
    %74 = vector.broadcast %73 : vector<16x1xf32> to vector<16x16xf32>
    %75 = arith.mulf %70, %74 : vector<16x16xf32>
    %76 = arith.truncf %75 : vector<16x16xf32> to vector<16x16xbf16>
    %77 = arith.truncf %63 : vector<16x16xf32> to vector<16x16xbf16>
    %cst_29 = arith.constant dense<0.000000e+00> : vector<16x16xf32>
    %78 = tpu.matmul %76, %77, %cst_29 {dimension_numbers = #tpu.dot_dimension_numbers<[1], [0], [0], [1], [0, 0, 1, 1], [], []>} : vector<16x16xbf16>, vector<16x16xbf16>, vector<16x16xf32> -> vector<16x16xf32>
    %c0_30 = arith.constant 0 : index
    %c16 = arith.constant 16 : index
    %79 = vector.load %arg12[%c0_30, %c16] : memref<16x32xf32, #tpu.memory_space<vmem>>, vector<16x16xf32>
    tpu.vector_store %arg12[%c0_30, %c16], %78 {strides = array<i32>} : memref<16x32xf32, #tpu.memory_space<vmem>>, vector<16x16xf32>,
    %c0_31 = arith.constant 0 : index
    %c0_32 = arith.constant 0 : index
    %80 = vector.load %arg12[%c0_31, %c0_32] : memref<16x32xf32, #tpu.memory_space<vmem>>, vector<16x32xf32>
    %c0_33 = arith.constant 0 : index
    %c0_34 = arith.constant 0 : index
    %c0_35 = arith.constant 0 : index
    %81 = vector.load %arg6[%c0_33, %c0_34, %c0_35] : memref<2x32x32xbf16, #tpu.memory_space<vmem>>, vector<1x32x32xbf16>
    %82 = vector.shape_cast %81 : vector<1x32x32xbf16> to vector<32x32xbf16>
    %83 = arith.truncf %80 : vector<16x32xf32> to vector<16x32xbf16>
    %cst_36 = arith.constant dense<0.000000e+00> : vector<16x32xf32>
    %84 = tpu.matmul %83, %82, %cst_36 {dimension_numbers = #tpu.dot_dimension_numbers<[1], [0], [0], [1], [0, 0, 1, 1], [], []>} : vector<16x32xbf16>, vector<32x32xbf16>, vector<16x32xf32> -> vector<16x32xf32>
    %c5 = arith.constant 5 : index
    %c0_37 = arith.constant 0 : index
    %85 = vector.load %arg10[%c5, %c0_37] : memref<20x96xf32, #tpu.memory_space<vmem>>, vector<1x32xf32>
    %86 = vector.broadcast %85 : vector<1x32xf32> to vector<16x32xf32>
    %87 = arith.addf %84, %86 : vector<16x32xf32>
    %88 = arith.addf %87, %33 : vector<16x32xf32>
    %c6 = arith.constant 6 : index
    %c0_38 = arith.constant 0 : index
    %89 = vector.load %arg10[%c6, %c0_38] : memref<20x96xf32, #tpu.memory_space<vmem>>, vector<1x32xf32>
    %c7 = arith.constant 7 : index
    %c0_39 = arith.constant 0 : index
    %90 = vector.load %arg10[%c7, %c0_39] : memref<20x96xf32, #tpu.memory_space<vmem>>, vector<1x32xf32>
    %cst_40 = arith.constant dense<0.000000e+00> : vector<16xf32>
    %91 = vector.multi_reduction <add>, %88, %cst_40 [1] : vector<16x32xf32> to vector<16xf32>
    %92 = vector.shape_cast %91 : vector<16xf32> to vector<16x1xf32>
    %cst_41 = arith.constant 3.200000e+01 : f32
    %93 = vector.broadcast %cst_41 : f32 to vector<16x1xf32>
    %94 = arith.divf %92, %93 : vector<16x1xf32>
    %95 = vector.broadcast %94 : vector<16x1xf32> to vector<16x32xf32>
    %96 = arith.subf %88, %95 : vector<16x32xf32>
    %97 = arith.mulf %96, %96 : vector<16x32xf32>
    %cst_42 = arith.constant dense<0.000000e+00> : vector<16xf32>
    %98 = vector.multi_reduction <add>, %97, %cst_42 [1] : vector<16x32xf32> to vector<16xf32>
    %99 = vector.shape_cast %98 : vector<16xf32> to vector<16x1xf32>
    %cst_43 = arith.constant 3.200000e+01 : f32
    %100 = vector.broadcast %cst_43 : f32 to vector<16x1xf32>
    %101 = arith.divf %99, %100 : vector<16x1xf32>
    %cst_44 = arith.constant 9.99999996E-13 : f32
    %102 = vector.broadcast %cst_44 : f32 to vector<16x1xf32>
    %103 = arith.addf %101, %102 : vector<16x1xf32>
    %104 = math.rsqrt %103 : vector<16x1xf32>
    %105 = vector.broadcast %104 : vector<16x1xf32> to vector<16x32xf32>
    %106 = arith.mulf %96, %105 : vector<16x32xf32>
    %107 = vector.broadcast %89 : vector<1x32xf32> to vector<16x32xf32>
    %108 = arith.mulf %106, %107 : vector<16x32xf32>
    %109 = vector.broadcast %90 : vector<1x32xf32> to vector<16x32xf32>
    %110 = arith.addf %108, %109 : vector<16x32xf32>
    %c0_45 = arith.constant 0 : index
    %c0_46 = arith.constant 0 : index
    %c0_47 = arith.constant 0 : index
    %111 = vector.load %arg7[%c0_45, %c0_46, %c0_47] : memref<2x32x64xbf16, #tpu.memory_space<vmem>>, vector<1x32x64xbf16>
    %112 = vector.shape_cast %111 : vector<1x32x64xbf16> to vector<32x64xbf16>
    %113 = arith.truncf %110 : vector<16x32xf32> to vector<16x32xbf16>
    %cst_48 = arith.constant dense<0.000000e+00> : vector<16x64xf32>
    %114 = tpu.matmul %113, %112, %cst_48 {dimension_numbers = #tpu.dot_dimension_numbers<[1], [0], [0], [1], [0, 0, 1, 1], [], []>} : vector<16x32xbf16>, vector<32x64xbf16>, vector<16x64xf32> -> vector<16x64xf32>
    %c8 = arith.constant 8 : index
    %c0_49 = arith.constant 0 : index
    %115 = vector.load %arg10[%c8, %c0_49] : memref<20x96xf32, #tpu.memory_space<vmem>>, vector<1x64xf32>
    %116 = vector.broadcast %115 : vector<1x64xf32> to vector<16x64xf32>
    %117 = arith.addf %114, %116 : vector<16x64xf32>
    %cst_50 = arith.constant 0.707106769 : f32
    %118 = vector.broadcast %cst_50 : f32 to vector<16x64xf32>
    %119 = arith.mulf %117, %118 : vector<16x64xf32>
    %120 = math.absf %119 : vector<16x64xf32>
    %cst_51 = arith.constant 0.327591091 : f32
    %121 = vector.broadcast %cst_51 : f32 to vector<16x64xf32>
    %122 = arith.mulf %121, %120 : vector<16x64xf32>
    %cst_52 = arith.constant 1.000000e+00 : f32
    %123 = vector.broadcast %cst_52 : f32 to vector<16x64xf32>
    %124 = arith.addf %123, %122 : vector<16x64xf32>
    %cst_53 = arith.constant 1.000000e+00 : f32
    %125 = vector.broadcast %cst_53 : f32 to vector<16x64xf32>
    %126 = arith.divf %125, %124 : vector<16x64xf32>
    %cst_54 = arith.constant 1.06140542 : f32
    %127 = vector.broadcast %cst_54 : f32 to vector<16x64xf32>
    %128 = arith.mulf %127, %126 : vector<16x64xf32>
    %cst_55 = arith.constant -1.45315206 : f32
    %129 = vector.broadcast %cst_55 : f32 to vector<16x64xf32>
    %130 = arith.addf %128, %129 : vector<16x64xf32>
    %131 = arith.mulf %130, %126 : vector<16x64xf32>
    %cst_56 = arith.constant 1.42141378 : f32
    %132 = vector.broadcast %cst_56 : f32 to vector<16x64xf32>
    %133 = arith.addf %131, %132 : vector<16x64xf32>
    %134 = arith.mulf %133, %126 : vector<16x64xf32>
    %cst_57 = arith.constant -0.284496725 : f32
    %135 = vector.broadcast %cst_57 : f32 to vector<16x64xf32>
    %136 = arith.addf %134, %135 : vector<16x64xf32>
    %137 = arith.mulf %136, %126 : vector<16x64xf32>
    %cst_58 = arith.constant 0.254829586 : f32
    %138 = vector.broadcast %cst_58 : f32 to vector<16x64xf32>
    %139 = arith.addf %137, %138 : vector<16x64xf32>
    %140 = arith.mulf %139, %126 : vector<16x64xf32>
    %cst_59 = arith.constant 0.000000e+00 : f32
    %141 = vector.broadcast %cst_59 : f32 to vector<16x64xf32>
    %142 = arith.subf %141, %120 : vector<16x64xf32>
    %143 = arith.mulf %142, %120 : vector<16x64xf32>
    %144 = math.exp %143 : vector<16x64xf32>
    %145 = arith.mulf %140, %144 : vector<16x64xf32>
    %cst_60 = arith.constant 1.000000e+00 : f32
    %146 = vector.broadcast %cst_60 : f32 to vector<16x64xf32>
    %147 = arith.subf %146, %145 : vector<16x64xf32>
    %cst_61 = arith.constant 0.000000e+00 : f32
    %148 = vector.broadcast %cst_61 : f32 to vector<16x64xf32>
    %149 = arith.cmpf oge, %119, %148 : vector<16x64xf32>
    %cst_62 = arith.constant 0.000000e+00 : f32
    %150 = vector.broadcast %cst_62 : f32 to vector<16x64xf32>
    %151 = arith.subf %150, %147 : vector<16x64xf32>
    %152 = arith.select %149, %147, %151 : vector<16x64xi1>, vector<16x64xf32>
    %cst_63 = arith.constant 5.000000e-01 : f32
    %153 = vector.broadcast %cst_63 : f32 to vector<16x64xf32>
    %154 = arith.mulf %153, %117 : vector<16x64xf32>
    %cst_64 = arith.constant 1.000000e+00 : f32
    %155 = vector.broadcast %cst_64 : f32 to vector<16x64xf32>
    %156 = arith.addf %155, %152 : vector<16x64xf32>
    %157 = arith.mulf %154, %156 : vector<16x64xf32>
    %c0_65 = arith.constant 0 : index
    %c0_66 = arith.constant 0 : index
    %c0_67 = arith.constant 0 : index
    %158 = vector.load %arg8[%c0_65, %c0_66, %c0_67] : memref<2x64x32xbf16, #tpu.memory_space<vmem>>, vector<1x64x32xbf16>
    %159 = vector.shape_cast %158 : vector<1x64x32xbf16> to vector<64x32xbf16>
    %160 = arith.truncf %157 : vector<16x64xf32> to vector<16x64xbf16>
    %cst_68 = arith.constant dense<0.000000e+00> : vector<16x32xf32>
    %161 = tpu.matmul %160, %159, %cst_68 {dimension_numbers = #tpu.dot_dimension_numbers<[1], [0], [0], [1], [0, 0, 1, 1], [], []>} : vector<16x64xbf16>, vector<64x32xbf16>, vector<16x32xf32> -> vector<16x32xf32>
    %c9 = arith.constant 9 : index
    %c0_69 = arith.constant 0 : index
    %162 = vector.load %arg10[%c9, %c0_69] : memref<20x96xf32, #tpu.memory_space<vmem>>, vector<1x32xf32>
    %163 = vector.broadcast %162 : vector<1x32xf32> to vector<16x32xf32>
    %164 = arith.addf %161, %163 : vector<16x32xf32>
    %165 = arith.addf %164, %110 : vector<16x32xf32>
    %c10 = arith.constant 10 : index
    %c0_70 = arith.constant 0 : index
    %166 = vector.load %arg10[%c10, %c0_70] : memref<20x96xf32, #tpu.memory_space<vmem>>, vector<1x32xf32>
    %c11 = arith.constant 11 : index
    %c0_71 = arith.constant 0 : index
    %167 = vector.load %arg10[%c11, %c0_71] : memref<20x96xf32, #tpu.memory_space<vmem>>, vector<1x32xf32>
    %cst_72 = arith.constant dense<0.000000e+00> : vector<16xf32>
    %168 = vector.multi_reduction <add>, %165, %cst_72 [1] : vector<16x32xf32> to vector<16xf32>
    %169 = vector.shape_cast %168 : vector<16xf32> to vector<16x1xf32>
    %cst_73 = arith.constant 3.200000e+01 : f32
    %170 = vector.broadcast %cst_73 : f32 to vector<16x1xf32>
    %171 = arith.divf %169, %170 : vector<16x1xf32>
    %172 = vector.broadcast %171 : vector<16x1xf32> to vector<16x32xf32>
    %173 = arith.subf %165, %172 : vector<16x32xf32>
    %174 = arith.mulf %173, %173 : vector<16x32xf32>
    %cst_74 = arith.constant dense<0.000000e+00> : vector<16xf32>
    %175 = vector.multi_reduction <add>, %174, %cst_74 [1] : vector<16x32xf32> to vector<16xf32>
    %176 = vector.shape_cast %175 : vector<16xf32> to vector<16x1xf32>
    %cst_75 = arith.constant 3.200000e+01 : f32
    %177 = vector.broadcast %cst_75 : f32 to vector<16x1xf32>
    %178 = arith.divf %176, %177 : vector<16x1xf32>
    %cst_76 = arith.constant 9.99999996E-13 : f32
    %179 = vector.broadcast %cst_76 : f32 to vector<16x1xf32>
    %180 = arith.addf %178, %179 : vector<16x1xf32>
    %181 = math.rsqrt %180 : vector<16x1xf32>
    %182 = vector.broadcast %181 : vector<16x1xf32> to vector<16x32xf32>
    %183 = arith.mulf %173, %182 : vector<16x32xf32>
    %184 = vector.broadcast %166 : vector<1x32xf32> to vector<16x32xf32>
    %185 = arith.mulf %183, %184 : vector<16x32xf32>
    %186 = vector.broadcast %167 : vector<1x32xf32> to vector<16x32xf32>
    %187 = arith.addf %185, %186 : vector<16x32xf32>
    %c1_77 = arith.constant 1 : index
    %c0_78 = arith.constant 0 : index
    %c0_79 = arith.constant 0 : index
    %188 = vector.load %arg5[%c1_77, %c0_78, %c0_79] : memref<2x32x96xbf16, #tpu.memory_space<vmem>>, vector<1x32x96xbf16>
    %189 = vector.shape_cast %188 : vector<1x32x96xbf16> to vector<32x96xbf16>
    %190 = arith.truncf %187 : vector<16x32xf32> to vector<16x32xbf16>
    %cst_80 = arith.constant dense<0.000000e+00> : vector<16x96xf32>
    %191 = tpu.matmul %190, %189, %cst_80 {dimension_numbers = #tpu.dot_dimension_numbers<[1], [0], [0], [1], [0, 0, 1, 1], [], []>} : vector<16x32xbf16>, vector<32x96xbf16>, vector<16x96xf32> -> vector<16x96xf32>
    %c12 = arith.constant 12 : index
    %c0_81 = arith.constant 0 : index
    %192 = vector.load %arg10[%c12, %c0_81] : memref<20x96xf32, #tpu.memory_space<vmem>>, vector<1x96xf32>
    %193 = vector.broadcast %192 : vector<1x96xf32> to vector<16x96xf32>
    %194 = arith.addf %191, %193 : vector<16x96xf32>
    %195 = vector.extract_strided_slice %194 {offsets = [0, 0], sizes = [16, 16], strides = [1, 1]} : vector<16x96xf32> to vector<16x16xf32>
    %196 = vector.extract_strided_slice %194 {offsets = [0, 32], sizes = [16, 16], strides = [1, 1]} : vector<16x96xf32> to vector<16x16xf32>
    %197 = vector.extract_strided_slice %194 {offsets = [0, 64], sizes = [16, 16], strides = [1, 1]} : vector<16x96xf32> to vector<16x16xf32>
    %198 = arith.truncf %195 : vector<16x16xf32> to vector<16x16xbf16>
    %199 = arith.truncf %196 : vector<16x16xf32> to vector<16x16xbf16>
    %cst_82 = arith.constant dense<0.000000e+00> : vector<16x16xf32>
    %200 = tpu.matmul %198, %199, %cst_82 {dimension_numbers = #tpu.dot_dimension_numbers<[1], [1], [0], [0], [0, 0, 1, 0], [], []>} : vector<16x16xbf16>, vector<16x16xbf16>, vector<16x16xf32> -> vector<16x16xf32>
    %cst_83 = arith.constant 2.500000e-01 : f32
    %201 = vector.broadcast %cst_83 : f32 to vector<16x16xf32>
    %202 = arith.mulf %200, %201 : vector<16x16xf32>
    %203 = arith.addf %202, %34 : vector<16x16xf32>
    %204 = math.exp %203 : vector<16x16xf32>
    %cst_84 = arith.constant dense<0.000000e+00> : vector<16xf32>
    %205 = vector.multi_reduction <add>, %204, %cst_84 [1] : vector<16x16xf32> to vector<16xf32>
    %206 = vector.shape_cast %205 : vector<16xf32> to vector<16x1xf32>
    %207 = tpu.reciprocal %206 {approx = true} : vector<16x1xf32> -> vector<16x1xf32>
    %208 = vector.broadcast %207 : vector<16x1xf32> to vector<16x16xf32>
    %209 = arith.mulf %204, %208 : vector<16x16xf32>
    %210 = arith.truncf %209 : vector<16x16xf32> to vector<16x16xbf16>
    %211 = arith.truncf %197 : vector<16x16xf32> to vector<16x16xbf16>
    %cst_85 = arith.constant dense<0.000000e+00> : vector<16x16xf32>
    %212 = tpu.matmul %210, %211, %cst_85 {dimension_numbers = #tpu.dot_dimension_numbers<[1], [0], [0], [1], [0, 0, 1, 1], [], []>} : vector<16x16xbf16>, vector<16x16xbf16>, vector<16x16xf32> -> vector<16x16xf32>
    %c0_86 = arith.constant 0 : index
    %c0_87 = arith.constant 0 : index
    %213 = vector.load %arg12[%c0_86, %c0_87] : memref<16x32xf32, #tpu.memory_space<vmem>>, vector<16x16xf32>
    tpu.vector_store %arg12[%c0_86, %c0_87], %212 {strides = array<i32>} : memref<16x32xf32, #tpu.memory_space<vmem>>, vector<16x16xf32>,
    %214 = vector.extract_strided_slice %194 {offsets = [0, 16], sizes = [16, 16], strides = [1, 1]} : vector<16x96xf32> to vector<16x16xf32>
    %215 = vector.extract_strided_slice %194 {offsets = [0, 48], sizes = [16, 16], strides = [1, 1]} : vector<16x96xf32> to vector<16x16xf32>
    %216 = vector.extract_strided_slice %194 {offsets = [0, 80], sizes = [16, 16], strides = [1, 1]} : vector<16x96xf32> to vector<16x16xf32>
    %217 = arith.truncf %214 : vector<16x16xf32> to vector<16x16xbf16>
    %218 = arith.truncf %215 : vector<16x16xf32> to vector<16x16xbf16>
    %cst_88 = arith.constant dense<0.000000e+00> : vector<16x16xf32>
    %219 = tpu.matmul %217, %218, %cst_88 {dimension_numbers = #tpu.dot_dimension_numbers<[1], [1], [0], [0], [0, 0, 1, 0], [], []>} : vector<16x16xbf16>, vector<16x16xbf16>, vector<16x16xf32> -> vector<16x16xf32>
    %cst_89 = arith.constant 2.500000e-01 : f32
    %220 = vector.broadcast %cst_89 : f32 to vector<16x16xf32>
    %221 = arith.mulf %219, %220 : vector<16x16xf32>
    %222 = arith.addf %221, %34 : vector<16x16xf32>
    %223 = math.exp %222 : vector<16x16xf32>
    %cst_90 = arith.constant dense<0.000000e+00> : vector<16xf32>
    %224 = vector.multi_reduction <add>, %223, %cst_90 [1] : vector<16x16xf32> to vector<16xf32>
    %225 = vector.shape_cast %224 : vector<16xf32> to vector<16x1xf32>
    %226 = tpu.reciprocal %225 {approx = true} : vector<16x1xf32> -> vector<16x1xf32>
    %227 = vector.broadcast %226 : vector<16x1xf32> to vector<16x16xf32>
    %228 = arith.mulf %223, %227 : vector<16x16xf32>
    %229 = arith.truncf %228 : vector<16x16xf32> to vector<16x16xbf16>
    %230 = arith.truncf %216 : vector<16x16xf32> to vector<16x16xbf16>
    %cst_91 = arith.constant dense<0.000000e+00> : vector<16x16xf32>
    %231 = tpu.matmul %229, %230, %cst_91 {dimension_numbers = #tpu.dot_dimension_numbers<[1], [0], [0], [1], [0, 0, 1, 1], [], []>} : vector<16x16xbf16>, vector<16x16xbf16>, vector<16x16xf32> -> vector<16x16xf32>
    %c0_92 = arith.constant 0 : index
    %c16_93 = arith.constant 16 : index
    %232 = vector.load %arg12[%c0_92, %c16_93] : memref<16x32xf32, #tpu.memory_space<vmem>>, vector<16x16xf32>
    tpu.vector_store %arg12[%c0_92, %c16_93], %231 {strides = array<i32>} : memref<16x32xf32, #tpu.memory_space<vmem>>, vector<16x16xf32>,
    %c0_94 = arith.constant 0 : index
    %c0_95 = arith.constant 0 : index
    %233 = vector.load %arg12[%c0_94, %c0_95] : memref<16x32xf32, #tpu.memory_space<vmem>>, vector<16x32xf32>
    %c1_96 = arith.constant 1 : index
    %c0_97 = arith.constant 0 : index
    %c0_98 = arith.constant 0 : index
    %234 = vector.load %arg6[%c1_96, %c0_97, %c0_98] : memref<2x32x32xbf16, #tpu.memory_space<vmem>>, vector<1x32x32xbf16>
    %235 = vector.shape_cast %234 : vector<1x32x32xbf16> to vector<32x32xbf16>
    %236 = arith.truncf %233 : vector<16x32xf32> to vector<16x32xbf16>
    %cst_99 = arith.constant dense<0.000000e+00> : vector<16x32xf32>
    %237 = tpu.matmul %236, %235, %cst_99 {dimension_numbers = #tpu.dot_dimension_numbers<[1], [0], [0], [1], [0, 0, 1, 1], [], []>} : vector<16x32xbf16>, vector<32x32xbf16>, vector<16x32xf32> -> vector<16x32xf32>
    %c13 = arith.constant 13 : index
    %c0_100 = arith.constant 0 : index
    %238 = vector.load %arg10[%c13, %c0_100] : memref<20x96xf32, #tpu.memory_space<vmem>>, vector<1x32xf32>
    %239 = vector.broadcast %238 : vector<1x32xf32> to vector<16x32xf32>
    %240 = arith.addf %237, %239 : vector<16x32xf32>
    %241 = arith.addf %240, %187 : vector<16x32xf32>
    %c14 = arith.constant 14 : index
    %c0_101 = arith.constant 0 : index
    %242 = vector.load %arg10[%c14, %c0_101] : memref<20x96xf32, #tpu.memory_space<vmem>>, vector<1x32xf32>
    %c15 = arith.constant 15 : index
    %c0_102 = arith.constant 0 : index
    %243 = vector.load %arg10[%c15, %c0_102] : memref<20x96xf32, #tpu.memory_space<vmem>>, vector<1x32xf32>
    %cst_103 = arith.constant dense<0.000000e+00> : vector<16xf32>
    %244 = vector.multi_reduction <add>, %241, %cst_103 [1] : vector<16x32xf32> to vector<16xf32>
    %245 = vector.shape_cast %244 : vector<16xf32> to vector<16x1xf32>
    %cst_104 = arith.constant 3.200000e+01 : f32
    %246 = vector.broadcast %cst_104 : f32 to vector<16x1xf32>
    %247 = arith.divf %245, %246 : vector<16x1xf32>
    %248 = vector.broadcast %247 : vector<16x1xf32> to vector<16x32xf32>
    %249 = arith.subf %241, %248 : vector<16x32xf32>
    %250 = arith.mulf %249, %249 : vector<16x32xf32>
    %cst_105 = arith.constant dense<0.000000e+00> : vector<16xf32>
    %251 = vector.multi_reduction <add>, %250, %cst_105 [1] : vector<16x32xf32> to vector<16xf32>
    %252 = vector.shape_cast %251 : vector<16xf32> to vector<16x1xf32>
    %cst_106 = arith.constant 3.200000e+01 : f32
    %253 = vector.broadcast %cst_106 : f32 to vector<16x1xf32>
    %254 = arith.divf %252, %253 : vector<16x1xf32>
    %cst_107 = arith.constant 9.99999996E-13 : f32
    %255 = vector.broadcast %cst_107 : f32 to vector<16x1xf32>
    %256 = arith.addf %254, %255 : vector<16x1xf32>
    %257 = math.rsqrt %256 : vector<16x1xf32>
    %258 = vector.broadcast %257 : vector<16x1xf32> to vector<16x32xf32>
    %259 = arith.mulf %249, %258 : vector<16x32xf32>
    %260 = vector.broadcast %242 : vector<1x32xf32> to vector<16x32xf32>
    %261 = arith.mulf %259, %260 : vector<16x32xf32>
    %262 = vector.broadcast %243 : vector<1x32xf32> to vector<16x32xf32>
    %263 = arith.addf %261, %262 : vector<16x32xf32>
    %c1_108 = arith.constant 1 : index
    %c0_109 = arith.constant 0 : index
    %c0_110 = arith.constant 0 : index
    %264 = vector.load %arg7[%c1_108, %c0_109, %c0_110] : memref<2x32x64xbf16, #tpu.memory_space<vmem>>, vector<1x32x64xbf16>
    %265 = vector.shape_cast %264 : vector<1x32x64xbf16> to vector<32x64xbf16>
    %266 = arith.truncf %263 : vector<16x32xf32> to vector<16x32xbf16>
    %cst_111 = arith.constant dense<0.000000e+00> : vector<16x64xf32>
    %267 = tpu.matmul %266, %265, %cst_111 {dimension_numbers = #tpu.dot_dimension_numbers<[1], [0], [0], [1], [0, 0, 1, 1], [], []>} : vector<16x32xbf16>, vector<32x64xbf16>, vector<16x64xf32> -> vector<16x64xf32>
    %c16_112 = arith.constant 16 : index
    %c0_113 = arith.constant 0 : index
    %268 = vector.load %arg10[%c16_112, %c0_113] : memref<20x96xf32, #tpu.memory_space<vmem>>, vector<1x64xf32>
    %269 = vector.broadcast %268 : vector<1x64xf32> to vector<16x64xf32>
    %270 = arith.addf %267, %269 : vector<16x64xf32>
    %cst_114 = arith.constant 0.707106769 : f32
    %271 = vector.broadcast %cst_114 : f32 to vector<16x64xf32>
    %272 = arith.mulf %270, %271 : vector<16x64xf32>
    %273 = math.absf %272 : vector<16x64xf32>
    %cst_115 = arith.constant 0.327591091 : f32
    %274 = vector.broadcast %cst_115 : f32 to vector<16x64xf32>
    %275 = arith.mulf %274, %273 : vector<16x64xf32>
    %cst_116 = arith.constant 1.000000e+00 : f32
    %276 = vector.broadcast %cst_116 : f32 to vector<16x64xf32>
    %277 = arith.addf %276, %275 : vector<16x64xf32>
    %cst_117 = arith.constant 1.000000e+00 : f32
    %278 = vector.broadcast %cst_117 : f32 to vector<16x64xf32>
    %279 = arith.divf %278, %277 : vector<16x64xf32>
    %cst_118 = arith.constant 1.06140542 : f32
    %280 = vector.broadcast %cst_118 : f32 to vector<16x64xf32>
    %281 = arith.mulf %280, %279 : vector<16x64xf32>
    %cst_119 = arith.constant -1.45315206 : f32
    %282 = vector.broadcast %cst_119 : f32 to vector<16x64xf32>
    %283 = arith.addf %281, %282 : vector<16x64xf32>
    %284 = arith.mulf %283, %279 : vector<16x64xf32>
    %cst_120 = arith.constant 1.42141378 : f32
    %285 = vector.broadcast %cst_120 : f32 to vector<16x64xf32>
    %286 = arith.addf %284, %285 : vector<16x64xf32>
    %287 = arith.mulf %286, %279 : vector<16x64xf32>
    %cst_121 = arith.constant -0.284496725 : f32
    %288 = vector.broadcast %cst_121 : f32 to vector<16x64xf32>
    %289 = arith.addf %287, %288 : vector<16x64xf32>
    %290 = arith.mulf %289, %279 : vector<16x64xf32>
    %cst_122 = arith.constant 0.254829586 : f32
    %291 = vector.broadcast %cst_122 : f32 to vector<16x64xf32>
    %292 = arith.addf %290, %291 : vector<16x64xf32>
    %293 = arith.mulf %292, %279 : vector<16x64xf32>
    %cst_123 = arith.constant 0.000000e+00 : f32
    %294 = vector.broadcast %cst_123 : f32 to vector<16x64xf32>
    %295 = arith.subf %294, %273 : vector<16x64xf32>
    %296 = arith.mulf %295, %273 : vector<16x64xf32>
    %297 = math.exp %296 : vector<16x64xf32>
    %298 = arith.mulf %293, %297 : vector<16x64xf32>
    %cst_124 = arith.constant 1.000000e+00 : f32
    %299 = vector.broadcast %cst_124 : f32 to vector<16x64xf32>
    %300 = arith.subf %299, %298 : vector<16x64xf32>
    %cst_125 = arith.constant 0.000000e+00 : f32
    %301 = vector.broadcast %cst_125 : f32 to vector<16x64xf32>
    %302 = arith.cmpf oge, %272, %301 : vector<16x64xf32>
    %cst_126 = arith.constant 0.000000e+00 : f32
    %303 = vector.broadcast %cst_126 : f32 to vector<16x64xf32>
    %304 = arith.subf %303, %300 : vector<16x64xf32>
    %305 = arith.select %302, %300, %304 : vector<16x64xi1>, vector<16x64xf32>
    %cst_127 = arith.constant 5.000000e-01 : f32
    %306 = vector.broadcast %cst_127 : f32 to vector<16x64xf32>
    %307 = arith.mulf %306, %270 : vector<16x64xf32>
    %cst_128 = arith.constant 1.000000e+00 : f32
    %308 = vector.broadcast %cst_128 : f32 to vector<16x64xf32>
    %309 = arith.addf %308, %305 : vector<16x64xf32>
    %310 = arith.mulf %307, %309 : vector<16x64xf32>
    %c1_129 = arith.constant 1 : index
    %c0_130 = arith.constant 0 : index
    %c0_131 = arith.constant 0 : index
    %311 = vector.load %arg8[%c1_129, %c0_130, %c0_131] : memref<2x64x32xbf16, #tpu.memory_space<vmem>>, vector<1x64x32xbf16>
    %312 = vector.shape_cast %311 : vector<1x64x32xbf16> to vector<64x32xbf16>
    %313 = arith.truncf %310 : vector<16x64xf32> to vector<16x64xbf16>
    %cst_132 = arith.constant dense<0.000000e+00> : vector<16x32xf32>
    %314 = tpu.matmul %313, %312, %cst_132 {dimension_numbers = #tpu.dot_dimension_numbers<[1], [0], [0], [1], [0, 0, 1, 1], [], []>} : vector<16x64xbf16>, vector<64x32xbf16>, vector<16x32xf32> -> vector<16x32xf32>
    %c17 = arith.constant 17 : index
    %c0_133 = arith.constant 0 : index
    %315 = vector.load %arg10[%c17, %c0_133] : memref<20x96xf32, #tpu.memory_space<vmem>>, vector<1x32xf32>
    %316 = vector.broadcast %315 : vector<1x32xf32> to vector<16x32xf32>
    %317 = arith.addf %314, %316 : vector<16x32xf32>
    %318 = arith.addf %317, %263 : vector<16x32xf32>
    %c18 = arith.constant 18 : index
    %c0_134 = arith.constant 0 : index
    %319 = vector.load %arg10[%c18, %c0_134] : memref<20x96xf32, #tpu.memory_space<vmem>>, vector<1x32xf32>
    %c19 = arith.constant 19 : index
    %c0_135 = arith.constant 0 : index
    %320 = vector.load %arg10[%c19, %c0_135] : memref<20x96xf32, #tpu.memory_space<vmem>>, vector<1x32xf32>
    %cst_136 = arith.constant dense<0.000000e+00> : vector<16xf32>
    %321 = vector.multi_reduction <add>, %318, %cst_136 [1] : vector<16x32xf32> to vector<16xf32>
    %322 = vector.shape_cast %321 : vector<16xf32> to vector<16x1xf32>
    %cst_137 = arith.constant 3.200000e+01 : f32
    %323 = vector.broadcast %cst_137 : f32 to vector<16x1xf32>
    %324 = arith.divf %322, %323 : vector<16x1xf32>
    %325 = vector.broadcast %324 : vector<16x1xf32> to vector<16x32xf32>
    %326 = arith.subf %318, %325 : vector<16x32xf32>
    %327 = arith.mulf %326, %326 : vector<16x32xf32>
    %cst_138 = arith.constant dense<0.000000e+00> : vector<16xf32>
    %328 = vector.multi_reduction <add>, %327, %cst_138 [1] : vector<16x32xf32> to vector<16xf32>
    %329 = vector.shape_cast %328 : vector<16xf32> to vector<16x1xf32>
    %cst_139 = arith.constant 3.200000e+01 : f32
    %330 = vector.broadcast %cst_139 : f32 to vector<16x1xf32>
    %331 = arith.divf %329, %330 : vector<16x1xf32>
    %cst_140 = arith.constant 9.99999996E-13 : f32
    %332 = vector.broadcast %cst_140 : f32 to vector<16x1xf32>
    %333 = arith.addf %331, %332 : vector<16x1xf32>
    %334 = math.rsqrt %333 : vector<16x1xf32>
    %335 = vector.broadcast %334 : vector<16x1xf32> to vector<16x32xf32>
    %336 = arith.mulf %326, %335 : vector<16x32xf32>
    %337 = vector.broadcast %319 : vector<1x32xf32> to vector<16x32xf32>
    %338 = arith.mulf %336, %337 : vector<16x32xf32>
    %339 = vector.broadcast %320 : vector<1x32xf32> to vector<16x32xf32>
    %340 = arith.addf %338, %339 : vector<16x32xf32>
    %341 = vector.extract_strided_slice %340 {offsets = [0, 0], sizes = [1, 32], strides = [1, 1]} : vector<16x32xf32> to vector<1x32xf32>
    %342 = vector.extract_strided_slice %340 {offsets = [8, 0], sizes = [1, 32], strides = [1, 1]} : vector<16x32xf32> to vector<1x32xf32>
    %343 = tpu.concatenate %341, %342 in 0 : vector<1x32xf32>, vector<1x32xf32> -> vector<2x32xf32>
    %c0_141 = arith.constant 0 : index
    %c0_142 = arith.constant 0 : index
    %344 = vector.load %arg9[%c0_141, %c0_142] : memref<32x36xbf16, #tpu.memory_space<vmem>>, vector<32x36xbf16>
    %345 = arith.truncf %343 : vector<2x32xf32> to vector<2x32xbf16>
    %346 = vector.extract_strided_slice %344 {offsets = [0, 0], sizes = [32, 32], strides = [1, 1]} : vector<32x36xbf16> to vector<32x32xbf16>
    %cst_143 = arith.constant dense<0.000000e+00> : vector<2x32xf32>
    %347 = tpu.matmul %345, %346, %cst_143 {dimension_numbers = #tpu.dot_dimension_numbers<[1], [0], [0], [1], [0, 0, 1, 1], [], []>} : vector<2x32xbf16>, vector<32x32xbf16>, vector<2x32xf32> -> vector<2x32xf32>
    %c2 = arith.constant 2 : index
    %c0_144 = arith.constant 0 : index
    %348 = vector.load %arg10[%c2, %c0_144] : memref<20x96xf32, #tpu.memory_space<vmem>>, vector<1x32xf32>
    %349 = vector.broadcast %348 : vector<1x32xf32> to vector<2x32xf32>
    %350 = arith.addf %347, %349 : vector<2x32xf32>
    %351 = math.tanh %350 : vector<2x32xf32>
    %352 = arith.truncf %351 : vector<2x32xf32> to vector<2x32xbf16>
    %353 = vector.extract_strided_slice %344 {offsets = [0, 32], sizes = [32, 4], strides = [1, 1]} : vector<32x36xbf16> to vector<32x4xbf16>
    %cst_145 = arith.constant dense<0.000000e+00> : vector<2x4xf32>
    %354 = tpu.matmul %352, %353, %cst_145 {dimension_numbers = #tpu.dot_dimension_numbers<[1], [0], [0], [1], [0, 0, 1, 1], [], []>} : vector<2x32xbf16>, vector<32x4xbf16>, vector<2x4xf32> -> vector<2x4xf32>
    %c3 = arith.constant 3 : index
    %c0_146 = arith.constant 0 : index
    %355 = vector.load %arg10[%c3, %c0_146] : memref<20x96xf32, #tpu.memory_space<vmem>>, vector<1x4xf32>
    %356 = vector.broadcast %355 : vector<1x4xf32> to vector<2x4xf32>
    %357 = arith.addf %354, %356 : vector<2x4xf32>
    %358 = tpu.concatenate %351, %357 in 1 : vector<2x32xf32>, vector<2x4xf32> -> vector<2x36xf32>
    %c0_147 = arith.constant 0 : index
    %c0_148 = arith.constant 0 : index
    %359 = vector.load %arg11[%c0_147, %c0_148] : memref<2x36xf32, #tpu.memory_space<vmem>>, vector<2x36xf32>
    tpu.vector_store %arg11[%c0_147, %c0_148], %358 {strides = array<i32>} : memref<2x36xf32, #tpu.memory_space<vmem>>, vector<2x36xf32>,
    return
  }
  func.func @transform_0(%arg0: i32) -> (i32, i32) {
    %c0_i32 = arith.constant 0 : i32
    %c0_i32_0 = arith.constant 0 : i32
    %c0_i32_1 = arith.constant 0 : i32
    return %c0_i32, %c0_i32_0 : i32, i32
  }
  func.func @transform_1(%arg0: i32) -> (i32, i32) {
    %c0_i32 = arith.constant 0 : i32
    %c0_i32_0 = arith.constant 0 : i32
    %c0_i32_1 = arith.constant 0 : i32
    return %c0_i32, %c0_i32_0 : i32, i32
  }
  func.func @transform_2(%arg0: i32) -> (i32, i32) {
    %c0_i32 = arith.constant 0 : i32
    %c0_i32_0 = arith.constant 0 : i32
    %c0_i32_1 = arith.constant 0 : i32
    return %c0_i32, %c0_i32_0 : i32, i32
  }
  func.func @transform_3(%arg0: i32) -> (i32, i32) {
    %c0_i32 = arith.constant 0 : i32
    %c0_i32_0 = arith.constant 0 : i32
    %c0_i32_1 = arith.constant 0 : i32
    return %c0_i32, %c0_i32_0 : i32, i32
  }
  func.func @transform_4(%arg0: i32) -> (i32, i32, i32) {
    %c0_i32 = arith.constant 0 : i32
    %c0_i32_0 = arith.constant 0 : i32
    %c0_i32_1 = arith.constant 0 : i32
    %c0_i32_2 = arith.constant 0 : i32
    return %c0_i32, %c0_i32_0, %c0_i32_1 : i32, i32, i32
  }
  func.func @transform_5(%arg0: i32) -> (i32, i32, i32) {
    %c0_i32 = arith.constant 0 : i32
    %c0_i32_0 = arith.constant 0 : i32
    %c0_i32_1 = arith.constant 0 : i32
    %c0_i32_2 = arith.constant 0 : i32
    return %c0_i32, %c0_i32_0, %c0_i32_1 : i32, i32, i32
  }
  func.func @transform_6(%arg0: i32) -> (i32, i32, i32) {
    %c0_i32 = arith.constant 0 : i32
    %c0_i32_0 = arith.constant 0 : i32
    %c0_i32_1 = arith.constant 0 : i32
    %c0_i32_2 = arith.constant 0 : i32
    return %c0_i32, %c0_i32_0, %c0_i32_1 : i32, i32, i32
  }
  func.func @transform_7(%arg0: i32) -> (i32, i32, i32) {
    %c0_i32 = arith.constant 0 : i32
    %c0_i32_0 = arith.constant 0 : i32
    %c0_i32_1 = arith.constant 0 : i32
    %c0_i32_2 = arith.constant 0 : i32
    return %c0_i32, %c0_i32_0, %c0_i32_1 : i32, i32, i32
  }
  func.func @transform_8(%arg0: i32) -> (i32, i32) {
    %c0_i32 = arith.constant 0 : i32
    %c0_i32_0 = arith.constant 0 : i32
    %c0_i32_1 = arith.constant 0 : i32
    return %c0_i32, %c0_i32_0 : i32, i32
  }
  func.func @transform_9(%arg0: i32) -> (i32, i32) {
    %c0_i32 = arith.constant 0 : i32
    %c0_i32_0 = arith.constant 0 : i32
    %c0_i32_1 = arith.constant 0 : i32
    return %c0_i32, %c0_i32_0 : i32, i32
  }
  func.func @transform_10(%arg0: i32) -> (i32, i32) {
    %c0_i32 = arith.constant 0 : i32
    %c0_i32_0 = arith.constant 0 : i32
    %c0_i32_1 = arith.constant 0 : i32
    return %c0_i32, %c0_i32_0 : i32, i32
  }
}

</mosaic_0001>

<bundles_post_ra>
// kernel: hanet_forward.1
= control target key start
LH: loop header
LB: loop body
LE: loop exit
PB: predicated region body
PF: predicated region fallthrough
CT: control target
= control target key end

     0   :  { %v2098_v0 = vmov 0   ;;  %v2099_v2 = vmov 0.0   ;;  %vm2100_vm0 = vmmov 0   ;;  %v38_v12 = vlaneseq  ;;  %s2102_s22 = smov 64   ;;  %s2105_s27 = smov 80   ;;  %s2537_s0 = inlined_call_operand.vmem [shape: s32[16,1], index: 0, kind: input, shape index: {}]   ;;  %s2538_s2 = inlined_call_operand.vmem [shape: bf16[128,32], index: 2, kind: input, shape index: {}]   ;;  %s2539_s3 = inlined_call_operand.vmem [shape: f32[16,32], index: 3, kind: input, shape index: {}]   ;;  %s2540_s4 = inlined_call_operand.vmem [shape: bf16[2,32,96], index: 4, kind: input, shape index: {}]   ;;  %s2541_s9 = inlined_call_operand.vmem [shape: f32[20,96], index: 9, kind: input, shape index: {}]   ;;  %s2542_s1 = inlined_call_operand.vmem [shape: f32[16,16], index: 1, kind: input, shape index: {}]   ;;  %s2543_s5 = inlined_call_operand.vmem [shape: bf16[2,32,32], index: 5, kind: input, shape index: {}]   ;;  %s2544_s6 = inlined_call_operand.vmem [shape: bf16[2,32,64], index: 6, kind: input, shape index: {}]   ;;  %s2545_s7 = inlined_call_operand.vmem [shape: bf16[2,64,32], index: 7, kind: input, shape index: {}]   ;;  %s2546_s8 = inlined_call_operand.vmem [shape: bf16[32,36], index: 8, kind: input, shape index: {}]   ;;  %s2547_s10 = inlined_call_operand.vmem [shape: f32[2,36], index: 10, kind: output, shape index: {}]  }
   0x1   :  { %1997 = vset.pattern.permute.xlu0 %v2098_v0  ;;  %v36_v1 = vld [vmem:[%s2537_s0] sm:$0xff]  ;;  %1830 = vmatprep.subr.bf16.mxu0 %v2099_v2  ;;  %v37_v4 = vld [vmem:[%s2537_s0 + $0x8] sm:$0xff]  ;;  %v2000_v6 = vld [vmem:[%s2538_s2 + $0x10] sm:$0xff]   ;;  %v2101_v16 = vmov 1.0|1.0   ;;  %vm161_vm4 = vcmask 261120  }
   0x2   :  { %41 = vperm.xlu0 %1997, %v36_v1   ;;  %v1998_v3 = vld [vmem:[%s2538_s2] sm:$0xff]   ;;  %1850 = vmatprep.subr.bf16.mxu1 %v2099_v2  ;;  %v1999_v5 = vld [vmem:[%s2538_s2 + $0x8] sm:$0xff]   ;;  %v2001_v7 = vld [vmem:[%s2538_s2 + $0x18] sm:$0xff]   ;;  %v39_v14 = vand.u32 127, %v38_v12  ;;  %s2103_s0 = smov 96   ;;  %vm273_vm5 = vcmask 130048  }
   0x3   :  { %1831 = vmatpush3.bf16.msra.mxu0 %v1998_v3  ;;  %1846 = vmatprep.mubr.msk.bf16.mxu0 %vm2100_vm0, %v2099_v2  ;;  %v2002_v8 = vld [vmem:[%s2538_s2 + $0x20] sm:$0xff]   ;;  %v2003_v9 = vld [vmem:[%s2538_s2 + $0x28] sm:$0xff]   ;;  %v2004_v10 = vld [vmem:[%s2538_s2 + $0x30] sm:$0xff]   ;;  %s2106_s28 = smov 48   ;;  %s2107_s13 = smov 16   ;;  %vm514_vm6 = vcmask 261248  }
   0x4   :  { %1832 = vmatprep.subr.bf16.mxu0 %v2099_v2  ;;  %1854 = vmatprep.mubr.msk.bf16.mxu1 %vm2100_vm0, %v2099_v2  ;;  %v2005_v11 = vld [vmem:[%s2538_s2 + $0x38] sm:$0xff]   ;;  %v69_v17 = vld [vmem:[%s2539_s3] sm:$0xff]  ;;  %v2007_v37 = vld [vmem:[%s2540_s4 + $0x8] sm:$0xff]   ;;  %vm785_vm9 = vcmask 523264   ;;  %vm1545_vm12 = vcmask 1040384   ;;  %s2108_s11 = smov 32  }
   0x5   :  { %v2006_v36 = vld [vmem:[%s2540_s4] sm:$0xff]   ;;  %vm1673_vm13 = vcmask 287744  }
   0x6   :  { %44 = vperm.xlu0 %1997, %v37_v4   ;;  %1851 = vmatpush3.bf16.msra.mxu1 %v2006_v36  ;;  %v1691_v46 = vld [vmem:[%s2541_s9] ss:$0 sm:$0xff]  ;;  %v1692_v50 = vld [vmem:[%s2541_s9 + $0x1] ss:$0 sm:$0xff]  ;;  %v1693_v55 = vld [vmem:[%s2541_s9 + $0x4] ss:$0 sm:$0xff] }
   0x7   :  { %1833 = vmatpush3.bf16.msra.mxu0 %v1999_v5  ;;  %1852 = vmatprep.subr.bf16.mxu1 %v2099_v2  ;;  %v2259_v3 = vld [vmem:[%s2542_s1] sm:$0xff] }
   0x8   :  { %1834 = vmatprep.subr.bf16.mxu0 %v2099_v2 }
   0xa   :  { %1853 = vmatpush3.bf16.msra.mxu1 %v2007_v37 }
   0xb   :  { %1835 = vmatpush3.bf16.msra.mxu0 %v2000_v6  ;;  %1858 = vmatprep.subr.bf16.mxu1 %v2099_v2 }
   0xc   :  { %1836 = vmatprep.subr.bf16.mxu0 %v2099_v2 }
   0xf   :  { %1837 = vmatpush3.bf16.msra.mxu0 %v2001_v7  ;;  %v2264_v7 = vld [vmem:[%s2542_s1 + $0x8] sm:$0xff]  ;;  %s2104_s1 = smov 112  }
  0x10   :  { %1838 = vmatprep.subr.bf16.mxu0 %v2099_v2 }
  0x13   :  { %1839 = vmatpush3.bf16.msra.mxu0 %v2002_v8 }
  0x14   :  { %1840 = vmatprep.subr.bf16.mxu0 %v2099_v2 }
  0x17   :  { %1841 = vmatpush3.bf16.msra.mxu0 %v2003_v9 }
  0x18   :  { %1842 = vmatprep.subr.bf16.mxu0 %v2099_v2 }
  0x1b   :  { %1843 = vmatpush3.bf16.msra.mxu0 %v2004_v10 }
  0x1c   :  { %1844 = vmatprep.subr.bf16.mxu0 %v2099_v2 }
  0x1f   :  { %1845 = vmatpush3.bf16.msra.mxu0 %v2005_v11 }
  0x20   :  { %1876 = vmatprep.subr.bf16.mxu0 %v2099_v2 }
  0x81   :  { %v42_v13 = vpop.permute.xlu0 %41 }
  0x82   :  { %vm46_vm1 = vcmp.eq.s32.totalorder %v39_v14, %v42_v13 }
  0x85   :  { %v45_v15 = vpop.permute.xlu0 %44 }
  0x86   :  { %vm47_vm2 = vcmp.eq.s32.totalorder %v39_v14, %v45_v15 }
  0x87   :  { %vm1689_vm3 = vmpackc.low %vm47_vm2, %vm46_vm1 }
  0x88   :  { %1847 = vmatmul.mubr.msk.bf16.vlgmr.msra.gmra.mrb[0].mxu0 %vm1689_vm3, %v2101_v16 }
  0x89   :  { %1878 = vmatprep.mubr.msk.bf16.mxu0 %vm2100_vm0, %v2099_v2 }
 0x15b   :  { %v152_v18 = vpop.f32.mrb[0].mxu0 }
 0x15c   :  { %v153_v19 = vadd.f32 %v152_v18, %v69_v17  ;;  %v1848_v20 = vpop.f32.mrb[1].mxu0 }
 0x15d   :  { %v155_v21 = vpop.f32.mrb[2].mxu0 }
 0x15e   :  { %v156_v22 = vadd.f32 %v155_v21, %v69_v17  ;;  %v1849_v23 = vpop.f32.mrb[3].mxu0  ;;  %v162_v24 = vsel %vm161_vm4, %v153_v19, 0.0 }
 0x15f   :  { %163 = vadd.xlane.f32.xlu1 %v162_v24 }
 0x160   :  { %v165_v25 = vsel %vm161_vm4, %v156_v22, 0.0 }
 0x163   :  { %166 = vadd.xlane.f32.xlu1 %v165_v25 }
 0x1ec   :  { %v164_v26 = vpop.xlane.xlu1 %163 }
 0x1ed   :  { %v169_v27 = vmul.f32 0.03125, %v164_v26 }
 0x1ef   :  { %v171_v28 = vsub.f32 %v153_v19, %v169_v27 }
 0x1f0   :  { %v167_v29 = vpop.xlane.xlu1 %166 }
 0x1f1   :  { %v170_v30 = vmul.f32 0.03125, %v167_v29  ;;  %v173_v31 = vmul.f32 %v171_v28, %v171_v28 }
 0x1f3   :  { %v172_v32 = vsub.f32 %v156_v22, %v170_v30  ;;  %v175_v33 = vsel %vm161_vm4, %v173_v31, 0.0 }
 0x1f4   :  { %176 = vadd.xlane.f32.xlu0 %v175_v33 }
 0x1f5   :  { %v174_v34 = vmul.f32 %v172_v32, %v172_v32 }
 0x1f7   :  { %v178_v35 = vsel %vm161_vm4, %v174_v34, 0.0 }
 0x1f8   :  { %179 = vadd.xlane.f32.xlu1 %v178_v35 }
 0x281   :  { %v177_v38 = vpop.xlane.xlu0 %176 }
 0x282   :  { %v181_v39 = vmul.f32 0.03125, %v177_v38 }
 0x284   :  { %v183_v40 = vadd.f32 1e-12, %v181_v39 }
 0x285   :  { %v180_v41 = vpop.xlane.xlu1 %179 }
 0x286   :  { %2028 = vrsqrt.f32 %v183_v40  ;;  %v182_v42 = vmul.f32 0.03125, %v180_v41 }
 0x288   :  { %v184_v43 = vadd.f32 1e-12, %v182_v42 }
 0x28a   :  { %2030 = vrsqrt.f32 %v184_v43 }
 0x290   :  { %v2029_v44 = vpop.eup %2028 }
 0x291   :  { %v187_v45 = vmul.f32 %v2029_v44, %v171_v28 }
 0x293   :  { %v193_v49 = vmul.f32 %v1691_v46, %v187_v45 }
 0x294   :  { %v2031_v47 = vpop.eup %2030 }
 0x295   :  { %v188_v48 = vmul.f32 %v2031_v47, %v172_v32  ;;  %v2231_v52 = vadd.f32 %v1692_v50, %v193_v49 }
 0x297   :  { %v194_v51 = vmul.f32 %v1691_v46, %v188_v48 }
 0x299   :  { %v2233_v53 = vadd.f32 %v1692_v50, %v194_v51 }
 0x29b   :  { %v207_v54 = vpack.c.bf16 %v2233_v53, %v2231_v52 }
 0x29d   :  { %1855 = vmatmul.mubr.msk.bf16.vlgmr.msra.gmra.mrb[0].mxu1 %vm161_vm4, %v207_v54 }
 0x29e   :  { %1860 = vmatprep.mubr.msk.bf16.mxu1 %vm2100_vm0, %v2099_v2 }
 0x370   :  { %v262_v56 = vpop.f32.mrb[0].mxu1 }
 0x371   :  { %v1856_v57 = vpop.f32.mrb[1].mxu1  ;;  %v263_v59 = vadd.f32 %v1693_v55, %v262_v56 }
 0x372   :  { %v265_v58 = vpop.f32.mrb[2].mxu1  ;;  %v2008_v57 = vld [vmem:[%s2543_s5] sm:$0xff]  }
 0x373   :  { %v266_v60 = vadd.f32 %v1693_v55, %v265_v58  ;;  %v1857_v61 = vpop.f32.mrb[3].mxu1  ;;  %v2009_v58 = vld [vmem:[%s2543_s5 + $0x8] sm:$0xff]  }
 0x375   :  { %v2243_v62 = vpack.c.bf16 %v266_v60, %v263_v59 }
 0x377   :  { %340 = vrot.lane.b32.xlu0 %v2243_v62, %s2102_s22  ;;  %271 = vrot.lane.b32.xlu1 %v2243_v62, %s2103_s0 }
 0x3e9   :  { %v272_v63 = vpop.permute.xlu1 %271  ;;  %v341_v1 = vpop.permute.xlu0 %340 }
 0x3ea   :  { %v278_v0 = vsel %vm273_vm5, %v272_v63, 0 }
 0x3eb   :  { %1859 = vmatpush3.bf16.xpose.msra.mxu1 %v278_v0 }
 0x3ec   :  { %1864 = vmatprep.subr.bf16.mxu1 %v2099_v2 }
 0x3f2   :  { %1861 = vmatmul.mubr.msk.bf16.vlgmr.msra.gmra.mrb[4].mxu1 %vm273_vm5, %v2243_v62 }
 0x3f3   :  { %1865 = vmatpush3.bf16.msra.mxu1 %v341_v1  ;;  %1866 = vmatprep.mubr.msk.bf16.mxu1 %vm2100_vm0, %v2099_v2 }
 0x3f4   :  { %1870 = vmatprep.subr.bf16.mxu1 %v2099_v2 }
 0x4c5   :  { %v314_v4 = vpop.f32.mrb[4].mxu1 }
 0x4c6   :  { %v321_v5 = vmul.f32 0.25, %v314_v4  ;;  %v1862_v6 = vpop.f32.mrb[5].mxu1 }
 0x4c7   :  { %v317_v8 = vpop.f32.mrb[6].mxu1  ;;  %v1701_v6 = vld [vmem:[%s2541_s9 + $0x5] ss:$0 sm:$0xff] }
 0x4c8   :  { %v323_v9 = vadd.f32 %v321_v5, %v2259_v3  ;;  %v322_v10 = vmul.f32 0.25, %v317_v8  ;;  %v1863_v11 = vpop.f32.mrb[7].mxu1 }
 0x4ca   :  { %v325_v12 = vmul.f32 1.442695, %v323_v9  ;;  %v324_v13 = vadd.f32 %v322_v10, %v2264_v7 }
 0x4cc   :  { %2032 = vpow2.f32 %v325_v12  ;;  %v327_v14 = vmul.f32 1.442695, %v324_v13 }
 0x4ce   :  { %2034 = vpow2.f32 %v327_v14 }
 0x4d6   :  { %v2033_v15 = vpop.eup %2032 }
 0x4d7   :  { %v329_v16 = vsel %vm273_vm5, %v2033_v15, 0.0 }
 0x4d8   :  { %v2035_v17 = vpop.eup %2034  ;;  %330 = vadd.xlane.f32.xlu1 %v329_v16 }
 0x4d9   :  { %v332_v18 = vsel %vm273_vm5, %v2035_v17, 0.0 }
 0x4da   :  { %333 = vadd.xlane.f32.xlu0 %v332_v18 }
 0x4e9   :  { %389 = vrot.lane.b32.xlu1 %v2243_v62, %s2104_s1 }
 0x4f0   :  { %391 = vrot.lane.b32.xlu0 %v2243_v62, %s2105_s27 }
 0x565   :  { %v331_v19 = vpop.xlane.xlu1 %330 }
 0x566   :  { %2036 = vrcp.f32 %v331_v19 }
 0x567   :  { %v334_v20 = vpop.xlane.xlu0 %333 }
 0x568   :  { %2038 = vrcp.f32 %v334_v20 }
 0x569   :  { %v390_v28 = vpop.permute.xlu1 %389 }
 0x56b   :  { %v392_v25 = vpop.permute.xlu0 %391 }
 0x56c   :  { %v397_v27 = vsel %vm273_vm5, %v392_v25, 0 }
 0x570   :  { %v2037_v21 = vpop.eup %2036 }
 0x571   :  { %v337_v23 = vmul.f32 %v2037_v21, %v2033_v15 }
 0x572   :  { %v2039_v22 = vpop.eup %2038 }
 0x573   :  { %v338_v24 = vmul.f32 %v2039_v22, %v2035_v17 }
 0x575   :  { %v339_v26 = vpack.c.bf16 %v338_v24, %v337_v23 }
 0x577   :  { %1867 = vmatmul.mubr.msk.bf16.vlgmr.msra.gmra.mrb[8].mxu1 %vm273_vm5, %v339_v26 }
 0x578   :  { %1871 = vmatpush3.bf16.xpose.msra.mxu1 %v397_v27  ;;  %1872 = vmatprep.mubr.msk.bf16.mxu1 %vm2100_vm0, %v2099_v2  ;;  %v2011_v27 = vld [vmem:[%s2544_s6 + $0x8] sm:$0xff]  }
 0x579   :  { %1882 = vmatprep.subr.bf16.mxu1 %v2099_v2 }
 0x57f   :  { %1873 = vmatmul.mubr.msk.bf16.vlgmr.msra.gmra.mrb[12].mxu1 %vm273_vm5, %v390_v28 }
 0x580   :  { %1886 = vmatprep.mubr.msk.bf16.mxu1 %vm2100_vm0, %v2099_v2  ;;  %1883 = vmatpush3.bf16.msra.mxu1 %v2008_v57 }
 0x581   :  { %1884 = vmatprep.subr.bf16.mxu1 %v2099_v2 }
 0x584   :  { %1885 = vmatpush3.bf16.msra.mxu1 %v2009_v58 }
 0x585   :  { %1898 = vmatprep.subr.bf16.mxu1 %v2099_v2 }
 0x64a   :  { %v380_v29 = vpop.f32.mrb[8].mxu1 }
 0x64b   :  { %387 = vst.msk [vmem:[#allocation2] sm:$0xff] %vm273_vm5, %v380_v29  ;;  %v1868_v30 = vpop.f32.mrb[9].mxu1 }
 0x64c   :  { %v383_v31 = vpop.f32.mrb[10].mxu1 }
 0x64d   :  { %388 = vst.msk [vmem:[#allocation2 + $0x8] sm:$0xff] %vm273_vm5, %v383_v31  ;;  %v1869_v32 = vpop.f32.mrb[11].mxu1 }
 0x652   :  { %v433_v33 = vpop.f32.mrb[12].mxu1 }
 0x653   :  { %v440_v34 = vmul.f32 0.25, %v433_v33  ;;  %v1874_v35 = vpop.f32.mrb[13].mxu1 }
 0x654   :  { %v436_v36 = vpop.f32.mrb[14].mxu1 }
 0x655   :  { %v442_v37 = vadd.f32 %v440_v34, %v2259_v3  ;;  %v441_v38 = vmul.f32 0.25, %v436_v36  ;;  %v1875_v39 = vpop.f32.mrb[15].mxu1  ;;  %v1705_v36 = vld [vmem:[%s2541_s9 + $0x6] ss:$0 sm:$0xff] }
 0x657   :  { %v444_v40 = vmul.f32 1.442695, %v442_v37  ;;  %v443_v41 = vadd.f32 %v441_v38, %v2264_v7 }
 0x659   :  { %2040 = vpow2.f32 %v444_v40  ;;  %v446_v42 = vmul.f32 1.442695, %v443_v41  ;;  %v1706_v40 = vld [vmem:[%s2541_s9 + $0x7] ss:$0 sm:$0xff] }
 0x65b   :  { %2042 = vpow2.f32 %v446_v42 }
 0x663   :  { %v2041_v43 = vpop.eup %2040 }
 0x664   :  { %v448_v44 = vsel %vm273_vm5, %v2041_v43, 0.0 }
 0x665   :  { %v2043_v45 = vpop.eup %2042  ;;  %449 = vadd.xlane.f32.xlu0 %v448_v44 }
 0x666   :  { %v451_v46 = vsel %vm273_vm5, %v2043_v45, 0.0 }
 0x667   :  { %452 = vadd.xlane.f32.xlu1 %v451_v46  ;;  %v2013_v46 = vld [vmem:[%s2545_s7 + $0x8] sm:$0xff]  }
 0x67b   :  { %459 = vrot.lane.b32.xlu0 %v2243_v62, %s2106_s28 }
 0x6f2   :  { %v450_v47 = vpop.xlane.xlu0 %449 }
 0x6f3   :  { %2044 = vrcp.f32 %v450_v47  ;;  %v2014_v47 = vld [vmem:[%s2545_s7 + $0x10] sm:$0xff]  }
 0x6f4   :  { %v453_v48 = vpop.xlane.xlu1 %452 }
 0x6f5   :  { %2046 = vrcp.f32 %v453_v48  ;;  %v2015_v48 = vld [vmem:[%s2545_s7 + $0x18] sm:$0xff]  }
 0x6f6   :  { %v460_v49 = vpop.permute.xlu0 %459 }
 0x6f7   :  { %1877 = vmatpush3.bf16.msra.mxu0 %v460_v49  ;;  %v1707_v49 = vld [vmem:[%s2541_s9 + $0x8] ss:$0 sm:$0xff] }
 0x6f8   :  { %1890 = vmatprep.subr.bf16.mxu0 %v2099_v2 }
 0x6fd   :  { %v2045_v50 = vpop.eup %2044 }
 0x6fe   :  { %v456_v54 = vmul.f32 %v2045_v50, %v2041_v43 }
 0x6ff   :  { %v2047_v51 = vpop.eup %2046 }
 0x700   :  { %v457_v55 = vmul.f32 %v2047_v51, %v2043_v45  ;;  %v2012_v45 = vld [vmem:[%s2545_s7] sm:$0xff]  }
 0x702   :  { %v458_v56 = vpack.c.bf16 %v457_v55, %v456_v54 }
 0x704   :  { %1879 = vmatmul.mubr.msk.bf16.vlgmr.msra.gmra.mrb[4].mxu0 %vm273_vm5, %v458_v56 }
 0x705   :  { %1894 = vmatprep.mubr.msk.bf16.mxu0 %vm2100_vm0, %v2099_v2 }
 0x7d7   :  { %v499_v59 = vpop.f32.mrb[4].mxu0 }
 0x7d8   :  { %508 = vrot.lane.b32.xlu1 %v499_v59, %s2107_s13  ;;  %v1880_v60 = vpop.f32.mrb[5].mxu0 }
 0x7d9   :  { %v502_v61 = vpop.f32.mrb[6].mxu0 }
 0x7da   :  { %510 = vrot.lane.b32.xlu0 %v502_v61, %s2107_s13  ;;  %v1881_v62 = vpop.f32.mrb[7].mxu0 }
 0x84a   :  { %v509_v63 = vpop.permute.xlu1 %508 }
 0x84b   :  { %515 = vst.msk [vmem:[#allocation2] sm:$0xff] %vm514_vm6, %v509_v63 }
 0x84c   :  { %v511_v0 = vpop.permute.xlu0 %510 }
 0x84d   :  { %516 = vst.msk [vmem:[#allocation2 + $0x8] sm:$0xff] %vm514_vm6, %v511_v0 }
 0x852   :  { %v517_v1 = vld [vmem:[#allocation2] sm:$0xff] }
 0x854   :  { %v518_v4 = vld [vmem:[#allocation2 + $0x8] sm:$0xff] }
 0x855   :  { %v523_v5 = vpack.c.bf16 %v518_v4, %v517_v1 }
 0x857   :  { %1887 = vmatmul.mubr.msk.bf16.vlgmr.msra.gmra.mrb[16].mxu1 %vm161_vm4, %v523_v5 }
 0x858   :  { %1906 = vmatprep.mubr.msk.bf16.mxu1 %vm2100_vm0, %v2099_v2  ;;  %1899 = vmatpush3.bf16.msra.mxu1 %v2012_v45 }
 0x859   :  { %1900 = vmatprep.subr.bf16.mxu1 %v2099_v2 }
 0x85c   :  { %1901 = vmatpush3.bf16.msra.mxu1 %v2013_v46 }
 0x85d   :  { %1902 = vmatprep.subr.bf16.mxu1 %v2099_v2 }
 0x860   :  { %1903 = vmatpush3.bf16.msra.mxu1 %v2014_v47 }
 0x861   :  { %1904 = vmatprep.subr.bf16.mxu1 %v2099_v2 }
 0x864   :  { %1905 = vmatpush3.bf16.msra.mxu1 %v2015_v48  ;;  %v1711_v48 = vld [vmem:[%s2541_s9 + $0x9] ss:$0 sm:$0xff] }
 0x865   :  { %1924 = vmatprep.subr.bf16.mxu1 %v2099_v2 }
 0x92a   :  { %v578_v8 = vpop.f32.mrb[16].mxu1 }
 0x92b   :  { %v579_v9 = vadd.f32 %v1701_v6, %v578_v8  ;;  %v1888_v10 = vpop.f32.mrb[17].mxu1 }
 0x92c   :  { %v581_v11 = vpop.f32.mrb[18].mxu1 }
 0x92d   :  { %v582_v12 = vadd.f32 %v1701_v6, %v581_v11  ;;  %v1889_v13 = vpop.f32.mrb[19].mxu1  ;;  %v585_v14 = vadd.f32 %v579_v9, %v2231_v52 }
 0x92f   :  { %v589_v15 = vsel %vm161_vm4, %v585_v14, 0.0  ;;  %v586_v16 = vadd.f32 %v582_v12, %v2233_v53  ;;  %v2010_v53 = vld [vmem:[%s2544_s6] sm:$0xff]  }
 0x930   :  { %590 = vadd.xlane.f32.xlu0 %v589_v15  ;;  %1891 = vmatpush3.bf16.msra.mxu0 %v2010_v53 }
 0x931   :  { %v592_v17 = vsel %vm161_vm4, %v586_v16, 0.0  ;;  %1892 = vmatprep.subr.bf16.mxu0 %v2099_v2 }
 0x932   :  { %593 = vadd.xlane.f32.xlu1 %v592_v17 }
 0x934   :  { %1893 = vmatpush3.bf16.msra.mxu0 %v2011_v27 }
 0x935   :  { %1910 = vmatprep.subr.bf16.mxu0 %v2099_v2 }
 0x9bd   :  { %v591_v18 = vpop.xlane.xlu0 %590 }
 0x9be   :  { %v595_v19 = vmul.f32 0.03125, %v591_v18 }
 0x9bf   :  { %v594_v20 = vpop.xlane.xlu1 %593 }
 0x9c0   :  { %v597_v21 = vsub.f32 %v585_v14, %v595_v19  ;;  %v596_v22 = vmul.f32 0.03125, %v594_v20 }
 0x9c2   :  { %v598_v23 = vsub.f32 %v586_v16, %v596_v22  ;;  %v599_v24 = vmul.f32 %v597_v21, %v597_v21 }
 0x9c4   :  { %v601_v25 = vsel %vm161_vm4, %v599_v24, 0.0  ;;  %v600_v26 = vmul.f32 %v598_v23, %v598_v23 }
 0x9c5   :  { %602 = vadd.xlane.f32.xlu0 %v601_v25 }
 0x9c6   :  { %v604_v52 = vsel %vm161_vm4, %v600_v26, 0.0 }
 0x9c9   :  { %605 = vadd.xlane.f32.xlu0 %v604_v52 }
 0xa52   :  { %v603_v28 = vpop.xlane.xlu0 %602 }
 0xa53   :  { %v607_v29 = vmul.f32 0.03125, %v603_v28 }
 0xa55   :  { %v609_v30 = vadd.f32 1e-12, %v607_v29 }
 0xa56   :  { %v606_v31 = vpop.xlane.xlu0 %605 }
 0xa57   :  { %2048 = vrsqrt.f32 %v609_v30  ;;  %v608_v32 = vmul.f32 0.03125, %v606_v31 }
 0xa59   :  { %v610_v33 = vadd.f32 1e-12, %v608_v32 }
 0xa5b   :  { %2050 = vrsqrt.f32 %v610_v33 }
 0xa61   :  { %v2049_v34 = vpop.eup %2048 }
 0xa62   :  { %v613_v35 = vmul.f32 %v2049_v34, %v597_v21 }
 0xa64   :  { %v619_v38 = vmul.f32 %v1705_v36, %v613_v35 }
 0xa65   :  { %v2051_v37 = vpop.eup %2050 }
 0xa66   :  { %v614_v39 = vmul.f32 %v2051_v37, %v598_v23  ;;  %v2332_v42 = vadd.f32 %v1706_v40, %v619_v38 }
 0xa68   :  { %v620_v41 = vmul.f32 %v1705_v36, %v614_v39 }
 0xa6a   :  { %v2334_v43 = vadd.f32 %v1706_v40, %v620_v41 }
 0xa6c   :  { %v631_v44 = vpack.c.bf16 %v2334_v43, %v2332_v42 }
 0xa6e   :  { %1895 = vmatmul.mubr.msk.bf16.vlgmr.msra.gmra.mrb[8].mxu0 %vm161_vm4, %v631_v44 }
 0xa6f   :  { %1914 = vmatprep.mubr.msk.bf16.mxu0 %vm2100_vm0, %v2099_v2 }
 0xb41   :  { %v686_v50 = vpop.f32.mrb[8].mxu0 }
 0xb42   :  { %v687_v51 = vadd.f32 %v1707_v49, %v686_v50  ;;  %v1896_v54 = vpop.f32.mrb[9].mxu0 }
 0xb43   :  { %v689_v55 = vpop.f32.mrb[10].mxu0 }
 0xb44   :  { %v693_v56 = vmul.f32 0.70710677, %v687_v51  ;;  %v690_v57 = vadd.f32 %v1707_v49, %v689_v55  ;;  %v1897_v58 = vpop.f32.mrb[11].mxu0  ;;  %v741_v40 = vmul.f32 0.5, %v687_v51 }
 0xb46   :  { %v695_v59 = vand.u32 2147483647, %v693_v56  ;;  %v694_v60 = vmul.f32 0.70710677, %v690_v57  ;;  %vm735_vm7 = vcmp.ge.f32.partialorder %v693_v56, 0.0  ;;  %v742_v41 = vmul.f32 0.5, %v690_v57 }
 0xb48   :  { %v697_v61 = vmul.f32 0.3275911, %v695_v59  ;;  %v696_v62 = vand.u32 2147483647, %v694_v60  ;;  %v723_v4 = vsub.f32 0.0, %v695_v59  ;;  %vm736_vm8 = vcmp.ge.f32.partialorder %v694_v60, 0.0 }
 0xb4a   :  { %v699_v63 = vadd.f32 1.0, %v697_v61  ;;  %v698_v0 = vmul.f32 0.3275911, %v696_v62  ;;  %v724_v5 = vsub.f32 0.0, %v696_v62  ;;  %v725_v8 = vmul.f32 %v723_v4, %v695_v59 }
 0xb4c   :  { %2052 = vrcp.f32 %v699_v63  ;;  %v700_v1 = vadd.f32 1.0, %v698_v0  ;;  %v726_v12 = vmul.f32 %v724_v5, %v696_v62  ;;  %v727_v13 = vmul.f32 1.442695, %v725_v8 }
 0xb4e   :  { %2054 = vrcp.f32 %v700_v1  ;;  %v729_v18 = vmul.f32 1.442695, %v726_v12 }
 0xb4f   :  { %2056 = vpow2.f32 %v727_v13 }
 0xb50   :  { %2058 = vpow2.f32 %v729_v18  ;;  %v1717_v18 = vld [vmem:[%s2541_s9 + $0xa] ss:$0 sm:$0xff] }
 0xb56   :  { %v2053_v6 = vpop.eup %2052 }
 0xb57   :  { %v705_v9 = vmul.f32 1.0614054, %v2053_v6 }
 0xb58   :  { %v2055_v10 = vpop.eup %2054 }
 0xb59   :  { %v707_v11 = vadd.f32 -1.4531521, %v705_v9  ;;  %v706_v14 = vmul.f32 1.0614054, %v2055_v10  ;;  %v2057_v27 = vpop.eup %2056  ;;  %v2017_v9 = vld [vmem:[%s2540_s4 + $0x18] sm:$0xff]  }
 0xb5a   :  { %v2059_v31 = vpop.eup %2058 }
 0xb5b   :  { %v709_v15 = vmul.f32 %v2053_v6, %v707_v11  ;;  %v708_v16 = vadd.f32 -1.4531521, %v706_v14 }
 0xb5d   :  { %v711_v17 = vadd.f32 1.4214138, %v709_v15  ;;  %v710_v19 = vmul.f32 %v2055_v10, %v708_v16 }
 0xb5f   :  { %v713_v20 = vmul.f32 %v2053_v6, %v711_v17  ;;  %v712_v21 = vadd.f32 1.4214138, %v710_v19 }
 0xb61   :  { %v715_v22 = vadd.f32 -0.28449672, %v713_v20  ;;  %v714_v23 = vmul.f32 %v2055_v10, %v712_v21 }
 0xb63   :  { %v717_v24 = vmul.f32 %v2053_v6, %v715_v22  ;;  %v716_v25 = vadd.f32 -0.28449672, %v714_v23  ;;  %v1718_v22 = vld [vmem:[%s2541_s9 + $0xb] ss:$0 sm:$0xff] }
 0xb65   :  { %v719_v26 = vadd.f32 0.2548296, %v717_v24  ;;  %v718_v52 = vmul.f32 %v2055_v10, %v716_v25 }
 0xb67   :  { %v721_v53 = vmul.f32 %v2053_v6, %v719_v26  ;;  %v720_v28 = vadd.f32 0.2548296, %v718_v52  ;;  %v1723_v52 = vld [vmem:[%s2541_s9 + $0xc] ss:$0 sm:$0xff] }
 0xb69   :  { %v731_v29 = vmul.f32 %v2057_v27, %v721_v53  ;;  %v722_v30 = vmul.f32 %v2055_v10, %v720_v28 }
 0xb6b   :  { %v733_v32 = vsub.f32 1.0, %v731_v29  ;;  %v732_v33 = vmul.f32 %v2059_v31, %v722_v30 }
 0xb6d   :  { %v737_v34 = vsub.f32 0.0, %v733_v32  ;;  %v734_v35 = vsub.f32 1.0, %v732_v33 }
 0xb6f   :  { %v739_v36 = vsel %vm735_vm7, %v733_v32, %v737_v34  ;;  %v738_v37 = vsub.f32 0.0, %v734_v35 }
 0xb70   :  { %v743_v38 = vadd.f32 1.0, %v739_v36 }
 0xb71   :  { %v740_v39 = vsel %vm736_vm8, %v734_v35, %v738_v37 }
 0xb72   :  { %v744_v44 = vadd.f32 1.0, %v740_v39  ;;  %v745_v45 = vmul.f32 %v743_v38, %v741_v40 }
 0xb74   :  { %v746_v46 = vmul.f32 %v744_v44, %v742_v41 }
 0xb76   :  { %v755_v47 = vpack.c.bf16 %v746_v46, %v745_v45 }
 0xb78   :  { %1907 = vmatmul.mubr.msk.bf16.vlgmr.msra.gmra.mrb[20].mxu1 %vm785_vm9, %v755_v47 }
 0xb79   :  { %1926 = vmatprep.mubr.msk.bf16.mxu1 %vm2100_vm0, %v2099_v2 }
 0xc4b   :  { %v823_v49 = vpop.f32.mrb[20].mxu1 }
 0xc4c   :  { %v824_v50 = vadd.f32 %v1711_v48, %v823_v49  ;;  %v1908_v54 = vpop.f32.mrb[21].mxu1 }
 0xc4d   :  { %v826_v55 = vpop.f32.mrb[22].mxu1 }
 0xc4e   :  { %v827_v51 = vadd.f32 %v1711_v48, %v826_v55  ;;  %v1909_v56 = vpop.f32.mrb[23].mxu1  ;;  %v830_v57 = vadd.f32 %v824_v50, %v2332_v42 }
 0xc50   :  { %v834_v58 = vsel %vm161_vm4, %v830_v57, 0.0  ;;  %v831_v59 = vadd.f32 %v827_v51, %v2334_v43  ;;  %v2016_v43 = vld [vmem:[%s2540_s4 + $0x10] sm:$0xff]  }
 0xc51   :  { %835 = vadd.xlane.f32.xlu0 %v834_v58  ;;  %1911 = vmatpush3.bf16.msra.mxu0 %v2016_v43 }
 0xc52   :  { %v837_v60 = vsel %vm161_vm4, %v831_v59, 0.0  ;;  %1912 = vmatprep.subr.bf16.mxu0 %v2099_v2 }
 0xc55   :  { %838 = vadd.xlane.f32.xlu0 %v837_v60  ;;  %1913 = vmatpush3.bf16.msra.mxu0 %v2017_v9 }
 0xc56   :  { %1918 = vmatprep.subr.bf16.mxu0 %v2099_v2 }
 0xcde   :  { %v836_v61 = vpop.xlane.xlu0 %835 }
 0xcdf   :  { %v840_v62 = vmul.f32 0.03125, %v836_v61 }
 0xce1   :  { %v842_v63 = vsub.f32 %v830_v57, %v840_v62 }
 0xce2   :  { %v839_v0 = vpop.xlane.xlu0 %838 }
 0xce3   :  { %v841_v1 = vmul.f32 0.03125, %v839_v0  ;;  %v844_v4 = vmul.f32 %v842_v63, %v842_v63 }
 0xce5   :  { %v843_v5 = vsub.f32 %v831_v59, %v841_v1  ;;  %v846_v6 = vsel %vm161_vm4, %v844_v4, 0.0 }
 0xce6   :  { %847 = vadd.xlane.f32.xlu1 %v846_v6 }
 0xce7   :  { %v845_v8 = vmul.f32 %v843_v5, %v843_v5 }
 0xce9   :  { %v849_v42 = vsel %vm161_vm4, %v845_v8, 0.0 }
 0xcea   :  { %850 = vadd.xlane.f32.xlu0 %v849_v42 }
 0xd73   :  { %v848_v10 = vpop.xlane.xlu1 %847 }
 0xd74   :  { %v852_v11 = vmul.f32 0.03125, %v848_v10 }
 0xd76   :  { %v854_v12 = vadd.f32 1e-12, %v852_v11 }
 0xd77   :  { %v851_v13 = vpop.xlane.xlu0 %850 }
 0xd78   :  { %2060 = vrsqrt.f32 %v854_v12  ;;  %v853_v14 = vmul.f32 0.03125, %v851_v13 }
 0xd7a   :  { %v855_v15 = vadd.f32 1e-12, %v853_v14 }
 0xd7c   :  { %2062 = vrsqrt.f32 %v855_v15 }
 0xd82   :  { %v2061_v16 = vpop.eup %2060 }
 0xd83   :  { %v858_v17 = vmul.f32 %v2061_v16, %v842_v63 }
 0xd85   :  { %v864_v20 = vmul.f32 %v1717_v18, %v858_v17 }
 0xd86   :  { %v2063_v19 = vpop.eup %2062 }
 0xd87   :  { %v859_v21 = vmul.f32 %v2063_v19, %v843_v5  ;;  %v2386_v24 = vadd.f32 %v1718_v22, %v864_v20 }
 0xd89   :  { %v865_v23 = vmul.f32 %v1717_v18, %v859_v21  ;;  %v2018_v21 = vld [vmem:[%s2543_s5 + $0x10] sm:$0xff]  }
 0xd8b   :  { %v2388_v25 = vadd.f32 %v1718_v22, %v865_v23  ;;  %v2019_v23 = vld [vmem:[%s2543_s5 + $0x18] sm:$0xff]  }
 0xd8d   :  { %v877_v26 = vpack.c.bf16 %v2388_v25, %v2386_v24 }
 0xd8f   :  { %1915 = vmatmul.mubr.msk.bf16.vlgmr.msra.gmra.mrb[12].mxu0 %vm161_vm4, %v877_v26 }
 0xd90   :  { %1920 = vmatprep.mubr.msk.bf16.mxu0 %vm2100_vm0, %v2099_v2 }
 0xe62   :  { %v932_v53 = vpop.f32.mrb[12].mxu0 }
 0xe63   :  { %v1916_v27 = vpop.f32.mrb[13].mxu0  ;;  %v933_v29 = vadd.f32 %v1723_v52, %v932_v53 }
 0xe64   :  { %v935_v28 = vpop.f32.mrb[14].mxu0 }
 0xe65   :  { %v936_v30 = vadd.f32 %v1723_v52, %v935_v28  ;;  %v1917_v31 = vpop.f32.mrb[15].mxu0 }
 0xe67   :  { %v939_v32 = vpack.c.bf16 %v936_v30, %v933_v29 }
 0xe69   :  { %1060 = vrot.lane.b32.xlu0 %v939_v32, %s2105_s27  ;;  %941 = vrot.lane.b32.xlu1 %v939_v32, %s2103_s0 }
 0xe6d   :  { %1058 = vrot.lane.b32.xlu1 %v939_v32, %s2104_s1 }
 0xedb   :  { %v942_v33 = vpop.permute.xlu1 %941  ;;  %v1061_v35 = vpop.permute.xlu0 %1060 }
 0xedc   :  { %v947_v34 = vsel %vm273_vm5, %v942_v33, 0  ;;  %v1066_v36 = vsel %vm273_vm5, %v1061_v35, 0 }
 0xedd   :  { %1919 = vmatpush3.bf16.xpose.msra.mxu0 %v947_v34 }
 0xede   :  { %1930 = vmatprep.subr.bf16.mxu0 %v2099_v2 }
 0xedf   :  { %v1059_v37 = vpop.permute.xlu1 %1058 }
 0xee4   :  { %1921 = vmatmul.mubr.msk.bf16.vlgmr.msra.gmra.mrb[16].mxu0 %vm273_vm5, %v939_v32 }
 0xee5   :  { %1931 = vmatpush3.bf16.xpose.msra.mxu0 %v1066_v36  ;;  %1932 = vmatprep.mubr.msk.bf16.mxu0 %vm2100_vm0, %v2099_v2  ;;  %v1735_v36 = vld [vmem:[%s2541_s9 + $0xd] ss:$0 sm:$0xff] }
 0xee6   :  { %1942 = vmatprep.subr.bf16.mxu0 %v2099_v2 }
 0xeec   :  { %1933 = vmatmul.mubr.msk.bf16.vlgmr.msra.gmra.mrb[20].mxu0 %vm273_vm5, %v1059_v37 }
 0xeed   :  { %1946 = vmatprep.mubr.msk.bf16.mxu0 %vm2100_vm0, %v2099_v2  ;;  %1943 = vmatpush3.bf16.msra.mxu0 %v2018_v21 }
 0xeee   :  { %1944 = vmatprep.subr.bf16.mxu0 %v2099_v2 }
 0xef1   :  { %1945 = vmatpush3.bf16.msra.mxu0 %v2019_v23 }
 0xef2   :  { %1958 = vmatprep.subr.bf16.mxu0 %v2099_v2 }
 0xfb7   :  { %v983_v38 = vpop.f32.mrb[16].mxu0 }
 0xfb8   :  { %v990_v39 = vmul.f32 0.25, %v983_v38  ;;  %v1922_v40 = vpop.f32.mrb[17].mxu0 }
 0xfb9   :  { %v986_v41 = vpop.f32.mrb[18].mxu0 }
 0xfba   :  { %v992_v44 = vadd.f32 %v990_v39, %v2259_v3  ;;  %v991_v45 = vmul.f32 0.25, %v986_v41  ;;  %v1923_v46 = vpop.f32.mrb[19].mxu0 }
 0xfbc   :  { %v994_v47 = vmul.f32 1.442695, %v992_v44  ;;  %v993_v48 = vadd.f32 %v991_v45, %v2264_v7 }
 0xfbe   :  { %2064 = vpow2.f32 %v994_v47  ;;  %v996_v49 = vmul.f32 1.442695, %v993_v48 }
 0xfbf   :  { %v1102_v50 = vpop.f32.mrb[20].mxu0 }
 0xfc0   :  { %2066 = vpow2.f32 %v996_v49  ;;  %v1109_v54 = vmul.f32 0.25, %v1102_v50  ;;  %v1934_v55 = vpop.f32.mrb[21].mxu0 }
 0xfc1   :  { %v1105_v51 = vpop.f32.mrb[22].mxu0 }
 0xfc2   :  { %v1111_v56 = vadd.f32 %v1109_v54, %v2259_v3  ;;  %v1110_v57 = vmul.f32 0.25, %v1105_v51  ;;  %v1935_v58 = vpop.f32.mrb[23].mxu0 }
 0xfc4   :  { %v1113_v59 = vmul.f32 1.442695, %v1111_v56  ;;  %v1112_v60 = vadd.f32 %v1110_v57, %v2264_v7 }
 0xfc6   :  { %2068 = vpow2.f32 %v1113_v59  ;;  %v1115_v61 = vmul.f32 1.442695, %v1112_v60  ;;  %v2021_v60 = vld [vmem:[%s2544_s6 + $0x18] sm:$0xff]  }
 0xfc8   :  { %v2065_v62 = vpop.eup %2064  ;;  %2070 = vpow2.f32 %v1115_v61 }
 0xfc9   :  { %v998_v63 = vsel %vm273_vm5, %v2065_v62, 0.0 }
 0xfca   :  { %v2067_v0 = vpop.eup %2066  ;;  %999 = vadd.xlane.f32.xlu1 %v998_v63 }
 0xfcb   :  { %v1001_v1 = vsel %vm273_vm5, %v2067_v0, 0.0 }
 0xfcc   :  { %1002 = vadd.xlane.f32.xlu0 %v1001_v1 }
 0xfd0   :  { %v2069_v4 = vpop.eup %2068 }
 0xfd1   :  { %v1117_v5 = vsel %vm273_vm5, %v2069_v4, 0.0 }
 0xfd2   :  { %v2071_v3 = vpop.eup %2070  ;;  %1118 = vadd.xlane.f32.xlu0 %v1117_v5 }
 0xfd3   :  { %v1120_v6 = vsel %vm273_vm5, %v2071_v3, 0.0 }
 0xfd4   :  { %1121 = vadd.xlane.f32.xlu1 %v1120_v6 }
 0xfe5   :  { %1128 = vrot.lane.b32.xlu1 %v939_v32, %s2106_s28 }
 0xfe8   :  { %1009 = vrot.lane.b32.xlu0 %v939_v32, %s2102_s22 }
0x1057   :  { %v1000_v7 = vpop.xlane.xlu1 %999 }
0x1058   :  { %2072 = vrcp.f32 %v1000_v7 }
0x1059   :  { %v1003_v8 = vpop.xlane.xlu0 %1002 }
0x105a   :  { %2074 = vrcp.f32 %v1003_v8 }
0x105f   :  { %v1119_v42 = vpop.xlane.xlu0 %1118 }
0x1060   :  { %2076 = vrcp.f32 %v1119_v42 }
0x1061   :  { %v1122_v43 = vpop.xlane.xlu1 %1121 }
0x1062   :  { %v2073_v9 = vpop.eup %2072  ;;  %2078 = vrcp.f32 %v1122_v43  ;;  %v1740_v43 = vld [vmem:[%s2541_s9 + $0xf] ss:$0 sm:$0xff] }
0x1063   :  { %v1010_v10 = vpop.permute.xlu0 %1009  ;;  %v1006_v12 = vmul.f32 %v2073_v9, %v2065_v62 }
0x1064   :  { %v2075_v11 = vpop.eup %2074  ;;  %1925 = vmatpush3.bf16.msra.mxu1 %v1010_v10 }
0x1065   :  { %v1007_v13 = vmul.f32 %v2075_v11, %v2067_v0  ;;  %1936 = vmatprep.subr.bf16.mxu1 %v2099_v2  ;;  %v1129_v15 = vpop.permute.xlu1 %1128 }
0x1067   :  { %v1008_v14 = vpack.c.bf16 %v1007_v13, %v1006_v12  ;;  %v2022_v13 = vld [vmem:[%s2545_s7 + $0x20] sm:$0xff]  }
0x1069   :  { %1927 = vmatmul.mubr.msk.bf16.vlgmr.msra.gmra.mrb[24].mxu1 %vm273_vm5, %v1008_v14  ;;  %v2023_v14 = vld [vmem:[%s2545_s7 + $0x28] sm:$0xff]  }
0x106a   :  { %v2077_v16 = vpop.eup %2076  ;;  %1937 = vmatpush3.bf16.msra.mxu1 %v1129_v15  ;;  %1938 = vmatprep.mubr.msk.bf16.mxu1 %vm2100_vm0, %v2099_v2  ;;  %v2024_v15 = vld [vmem:[%s2545_s7 + $0x30] sm:$0xff]  }
0x106b   :  { %1950 = vmatprep.subr.bf16.mxu1 %v2099_v2  ;;  %v1125_v18 = vmul.f32 %v2077_v16, %v2069_v4  ;;  %v2025_v16 = vld [vmem:[%s2545_s7 + $0x38] sm:$0xff]  }
0x106c   :  { %v2079_v17 = vpop.eup %2078 }
0x106d   :  { %v1126_v19 = vmul.f32 %v2079_v17, %v2071_v3  ;;  %v1739_v3 = vld [vmem:[%s2541_s9 + $0xe] ss:$0 sm:$0xff]  ;;  %v1745_v17 = vld [vmem:[%s2541_s9 + $0x10] ss:$0 sm:$0xff] }
0x106f   :  { %v1127_v20 = vpack.c.bf16 %v1126_v19, %v1125_v18 }
0x1071   :  { %1939 = vmatmul.mubr.msk.bf16.vlgmr.msra.gmra.mrb[28].mxu1 %vm273_vm5, %v1127_v20 }
0x1072   :  { %1954 = vmatprep.mubr.msk.bf16.mxu1 %vm2100_vm0, %v2099_v2 }
0x113c   :  { %v1049_v22 = vpop.f32.mrb[24].mxu1 }
0x113d   :  { %1056 = vst.msk [vmem:[#allocation2] sm:$0xff] %vm273_vm5, %v1049_v22  ;;  %v1928_v26 = vpop.f32.mrb[25].mxu1 }
0x113e   :  { %v1052_v52 = vpop.f32.mrb[26].mxu1 }
0x113f   :  { %1057 = vst.msk [vmem:[#allocation2 + $0x8] sm:$0xff] %vm273_vm5, %v1052_v52  ;;  %v1929_v53 = vpop.f32.mrb[27].mxu1 }
0x1144   :  { %v1168_v27 = vpop.f32.mrb[28].mxu1 }
0x1145   :  { %1177 = vrot.lane.b32.xlu1 %v1168_v27, %s2107_s13  ;;  %v1940_v28 = vpop.f32.mrb[29].mxu1 }
0x1146   :  { %v1171_v29 = vpop.f32.mrb[30].mxu1 }
0x1147   :  { %1179 = vrot.lane.b32.xlu0 %v1171_v29, %s2107_s13  ;;  %v1941_v30 = vpop.f32.mrb[31].mxu1 }
0x11b7   :  { %v1178_v31 = vpop.permute.xlu1 %1177 }
0x11b8   :  { %1183 = vst.msk [vmem:[#allocation2] sm:$0xff] %vm514_vm6, %v1178_v31 }
0x11b9   :  { %v1180_v32 = vpop.permute.xlu0 %1179 }
0x11ba   :  { %1184 = vst.msk [vmem:[#allocation2 + $0x8] sm:$0xff] %vm514_vm6, %v1180_v32 }
0x11bf   :  { %v1185_v33 = vld [vmem:[#allocation2] sm:$0xff] }
0x11c1   :  { %v1186_v34 = vld [vmem:[#allocation2 + $0x8] sm:$0xff] }
0x11c2   :  { %v1192_v35 = vpack.c.bf16 %v1186_v34, %v1185_v33 }
0x11c4   :  { %1947 = vmatmul.mubr.msk.bf16.vlgmr.msra.gmra.mrb[24].mxu0 %vm161_vm4, %v1192_v35 }
0x11c5   :  { %1966 = vmatprep.mubr.msk.bf16.mxu0 %vm2100_vm0, %v2099_v2  ;;  %1959 = vmatpush3.bf16.msra.mxu0 %v2022_v13 }
0x11c6   :  { %1960 = vmatprep.subr.bf16.mxu0 %v2099_v2 }
0x11c9   :  { %1961 = vmatpush3.bf16.msra.mxu0 %v2023_v14  ;;  %v1757_v14 = vld [vmem:[%s2541_s9 + $0x11] ss:$0 sm:$0xff] }
0x11ca   :  { %1962 = vmatprep.subr.bf16.mxu0 %v2099_v2 }
0x11cd   :  { %1963 = vmatpush3.bf16.msra.mxu0 %v2024_v15 }
0x11ce   :  { %1964 = vmatprep.subr.bf16.mxu0 %v2099_v2 }
0x11d1   :  { %1965 = vmatpush3.bf16.msra.mxu0 %v2025_v16 }
0x1297   :  { %v1247_v37 = vpop.f32.mrb[24].mxu0 }
0x1298   :  { %v1248_v38 = vadd.f32 %v1735_v36, %v1247_v37  ;;  %v1948_v39 = vpop.f32.mrb[25].mxu0 }
0x1299   :  { %v1250_v40 = vpop.f32.mrb[26].mxu0 }
0x129a   :  { %v1251_v41 = vadd.f32 %v1735_v36, %v1250_v40  ;;  %v1949_v44 = vpop.f32.mrb[27].mxu0  ;;  %v1254_v45 = vadd.f32 %v1248_v38, %v2386_v24 }
0x129c   :  { %v1258_v46 = vsel %vm161_vm4, %v1254_v45, 0.0  ;;  %v1255_v47 = vadd.f32 %v1251_v41, %v2388_v25  ;;  %v2020_v25 = vld [vmem:[%s2544_s6 + $0x10] sm:$0xff]  }
0x129d   :  { %1259 = vadd.xlane.f32.xlu1 %v1258_v46  ;;  %1951 = vmatpush3.bf16.msra.mxu1 %v2020_v25 }
0x129e   :  { %v1261_v48 = vsel %vm161_vm4, %v1255_v47, 0.0  ;;  %1952 = vmatprep.subr.bf16.mxu1 %v2099_v2 }
0x129f   :  { %1262 = vadd.xlane.f32.xlu0 %v1261_v48 }
0x12a1   :  { %1953 = vmatpush3.bf16.msra.mxu1 %v2021_v60 }
0x12a2   :  { %1970 = vmatprep.subr.bf16.mxu1 %v2099_v2 }
0x132a   :  { %v1260_v49 = vpop.xlane.xlu1 %1259 }
0x132b   :  { %v1264_v50 = vmul.f32 0.03125, %v1260_v49 }
0x132c   :  { %v1263_v54 = vpop.xlane.xlu0 %1262 }
0x132d   :  { %v1266_v55 = vsub.f32 %v1254_v45, %v1264_v50  ;;  %v1265_v51 = vmul.f32 0.03125, %v1263_v54 }
0x132f   :  { %v1267_v56 = vsub.f32 %v1255_v47, %v1265_v51  ;;  %v1268_v57 = vmul.f32 %v1266_v55, %v1266_v55 }
0x1331   :  { %v1270_v58 = vsel %vm161_vm4, %v1268_v57, 0.0  ;;  %v1269_v59 = vmul.f32 %v1267_v56, %v1267_v56 }
0x1332   :  { %1271 = vadd.xlane.f32.xlu0 %v1270_v58 }
0x1333   :  { %v1273_v24 = vsel %vm161_vm4, %v1269_v59, 0.0 }
0x1334   :  { %1274 = vadd.xlane.f32.xlu1 %v1273_v24 }
0x13bf   :  { %v1272_v61 = vpop.xlane.xlu0 %1271 }
0x13c0   :  { %v1276_v62 = vmul.f32 0.03125, %v1272_v61 }
0x13c1   :  { %v1275_v63 = vpop.xlane.xlu1 %1274 }
0x13c2   :  { %v1278_v0 = vadd.f32 1e-12, %v1276_v62  ;;  %v1277_v1 = vmul.f32 0.03125, %v1275_v63 }
0x13c4   :  { %2080 = vrsqrt.f32 %v1278_v0  ;;  %v1279_v4 = vadd.f32 1e-12, %v1277_v1 }
0x13c6   :  { %2082 = vrsqrt.f32 %v1279_v4 }
0x13ce   :  { %v2081_v5 = vpop.eup %2080 }
0x13cf   :  { %v1282_v6 = vmul.f32 %v2081_v5, %v1266_v55 }
0x13d0   :  { %v2083_v7 = vpop.eup %2082 }
0x13d1   :  { %v1288_v8 = vmul.f32 %v1739_v3, %v1282_v6  ;;  %v1283_v42 = vmul.f32 %v2083_v7, %v1267_v56 }
0x13d3   :  { %v1289_v9 = vmul.f32 %v1739_v3, %v1283_v42  ;;  %v2469_v10 = vadd.f32 %v1740_v43, %v1288_v8 }
0x13d5   :  { %v2471_v11 = vadd.f32 %v1740_v43, %v1289_v9 }
0x13d7   :  { %v1301_v12 = vpack.c.bf16 %v2471_v11, %v2469_v10 }
0x13d9   :  { %1955 = vmatmul.mubr.msk.bf16.vlgmr.msra.gmra.mrb[32].mxu1 %vm161_vm4, %v1301_v12 }
0x13da   :  { %1974 = vmatprep.mubr.msk.bf16.mxu1 %vm2100_vm0, %v2099_v2 }
0x14ac   :  { %v1356_v18 = vpop.f32.mrb[32].mxu1 }
0x14ad   :  { %v1357_v19 = vadd.f32 %v1745_v17, %v1356_v18  ;;  %v1956_v20 = vpop.f32.mrb[33].mxu1 }
0x14ae   :  { %v1359_v21 = vpop.f32.mrb[34].mxu1 }
0x14af   :  { %v1363_v22 = vmul.f32 0.70710677, %v1357_v19  ;;  %v1360_v23 = vadd.f32 %v1745_v17, %v1359_v21  ;;  %v1957_v26 = vpop.f32.mrb[35].mxu1  ;;  %v1411_v8 = vmul.f32 0.5, %v1357_v19 }
0x14b1   :  { %v1365_v52 = vand.u32 2147483647, %v1363_v22  ;;  %v1364_v53 = vmul.f32 0.70710677, %v1360_v23  ;;  %vm1405_vm10 = vcmp.ge.f32.partialorder %v1363_v22, 0.0  ;;  %v1412_v42 = vmul.f32 0.5, %v1360_v23 }
0x14b3   :  { %v1367_v27 = vmul.f32 0.3275911, %v1365_v52  ;;  %v1366_v28 = vand.u32 2147483647, %v1364_v53  ;;  %v1393_v32 = vsub.f32 0.0, %v1365_v52  ;;  %vm1406_vm11 = vcmp.ge.f32.partialorder %v1364_v53, 0.0 }
0x14b5   :  { %v1369_v29 = vadd.f32 1.0, %v1367_v27  ;;  %v1368_v30 = vmul.f32 0.3275911, %v1366_v28  ;;  %v1394_v33 = vsub.f32 0.0, %v1366_v28  ;;  %v1395_v35 = vmul.f32 %v1393_v32, %v1365_v52 }
0x14b7   :  { %2084 = vrcp.f32 %v1369_v29  ;;  %v1370_v31 = vadd.f32 1.0, %v1368_v30  ;;  %v1396_v39 = vmul.f32 %v1394_v33, %v1366_v28  ;;  %v1397_v40 = vmul.f32 1.442695, %v1395_v35 }
0x14b9   :  { %2086 = vrcp.f32 %v1370_v31  ;;  %v1399_v47 = vmul.f32 1.442695, %v1396_v39 }
0x14ba   :  { %2088 = vpow2.f32 %v1397_v40 }
0x14bb   :  { %2090 = vpow2.f32 %v1399_v47 }
0x14c1   :  { %v2085_v34 = vpop.eup %2084 }
0x14c2   :  { %v1375_v36 = vmul.f32 1.0614054, %v2085_v34 }
0x14c3   :  { %v2087_v37 = vpop.eup %2086 }
0x14c4   :  { %v1377_v38 = vadd.f32 -1.4531521, %v1375_v36  ;;  %v1376_v41 = vmul.f32 1.0614054, %v2087_v37  ;;  %v2089_v24 = vpop.eup %2088 }
0x14c5   :  { %v2091_v62 = vpop.eup %2090 }
0x14c6   :  { %v1379_v44 = vmul.f32 %v2085_v34, %v1377_v38  ;;  %v1378_v45 = vadd.f32 -1.4531521, %v1376_v41 }
0x14c8   :  { %v1381_v46 = vadd.f32 1.4214138, %v1379_v44  ;;  %v1380_v48 = vmul.f32 %v2087_v37, %v1378_v45 }
0x14ca   :  { %v1383_v49 = vmul.f32 %v2085_v34, %v1381_v46  ;;  %v1382_v50 = vadd.f32 1.4214138, %v1380_v48  ;;  %v1763_v46 = vld [vmem:[%s2541_s9 + $0x12] ss:$0 sm:$0xff] }
0x14cc   :  { %v1385_v54 = vadd.f32 -0.28449672, %v1383_v49  ;;  %v1384_v55 = vmul.f32 %v2087_v37, %v1382_v50  ;;  %v1764_v50 = vld [vmem:[%s2541_s9 + $0x13] ss:$0 sm:$0xff] }
0x14ce   :  { %v1387_v51 = vmul.f32 %v2085_v34, %v1385_v54  ;;  %v1386_v56 = vadd.f32 -0.28449672, %v1384_v55 }
0x14d0   :  { %v1389_v57 = vadd.f32 0.2548296, %v1387_v51  ;;  %v1388_v58 = vmul.f32 %v2087_v37, %v1386_v56 }
0x14d2   :  { %v1391_v59 = vmul.f32 %v2085_v34, %v1389_v57  ;;  %v1390_v25 = vadd.f32 0.2548296, %v1388_v58  ;;  %v2027_v34 = vld [vmem:[%s2546_s8 + $0x8] sm:$0xff]  }
0x14d4   :  { %v1401_v60 = vmul.f32 %v2089_v24, %v1391_v59  ;;  %v1392_v61 = vmul.f32 %v2087_v37, %v1390_v25  ;;  %v1765_v24 = vld [vmem:[%s2541_s9 + $0x2] ss:$0 sm:$0xff] }
0x14d6   :  { %v1403_v63 = vsub.f32 1.0, %v1401_v60  ;;  %v1402_v0 = vmul.f32 %v2091_v62, %v1392_v61 }
0x14d8   :  { %v1407_v1 = vsub.f32 0.0, %v1403_v63  ;;  %v1404_v4 = vsub.f32 1.0, %v1402_v0 }
0x14da   :  { %v1409_v5 = vsel %vm1405_vm10, %v1403_v63, %v1407_v1  ;;  %v1408_v3 = vsub.f32 0.0, %v1404_v4 }
0x14db   :  { %v1413_v6 = vadd.f32 1.0, %v1409_v5 }
0x14dc   :  { %v1410_v7 = vsel %vm1406_vm11, %v1404_v4, %v1408_v3  ;;  %v1769_v4 = vld [vmem:[%s2541_s9 + $0x3] ss:$0 sm:$0xff] }
0x14dd   :  { %v1414_v43 = vadd.f32 1.0, %v1410_v7  ;;  %v1415_v9 = vmul.f32 %v1413_v6, %v1411_v8 }
0x14df   :  { %v1416_v12 = vmul.f32 %v1414_v43, %v1412_v42 }
0x14e1   :  { %v1426_v13 = vpack.c.bf16 %v1416_v12, %v1415_v9 }
0x14e3   :  { %1967 = vmatmul.mubr.msk.bf16.vlgmr.msra.gmra.mrb[28].mxu0 %vm785_vm9, %v1426_v13 }
0x15b6   :  { %v1493_v15 = vpop.f32.mrb[28].mxu0 }
0x15b7   :  { %v1494_v16 = vadd.f32 %v1757_v14, %v1493_v15  ;;  %v1968_v17 = vpop.f32.mrb[29].mxu0 }
0x15b8   :  { %v1496_v18 = vpop.f32.mrb[30].mxu0 }
0x15b9   :  { %v1497_v20 = vadd.f32 %v1757_v14, %v1496_v18  ;;  %v1969_v21 = vpop.f32.mrb[31].mxu0  ;;  %v1500_v22 = vadd.f32 %v1494_v16, %v2469_v10 }
0x15bb   :  { %v1504_v19 = vsel %vm161_vm4, %v1500_v22, 0.0  ;;  %v1501_v23 = vadd.f32 %v1497_v20, %v2471_v11  ;;  %v2026_v11 = vld [vmem:[%s2546_s8] sm:$0xff]  }
0x15bc   :  { %1505 = vadd.xlane.f32.xlu1 %v1504_v19  ;;  %1971 = vmatpush3.bf16.msra.mxu1 %v2026_v11 }
0x15bd   :  { %v1507_v26 = vsel %vm161_vm4, %v1501_v23, 0.0  ;;  %1972 = vmatprep.subr.bf16.mxu1 %v2099_v2 }
0x15be   :  { %1508 = vadd.xlane.f32.xlu0 %v1507_v26 }
0x15c0   :  { %1973 = vmatpush3.bf16.msra.mxu1 %v2027_v34 }
0x15c1   :  { %1978 = vmatprep.subr.bf16.mxu1 %v2099_v2 }
0x1649   :  { %v1506_v52 = vpop.xlane.xlu1 %1505 }
0x164a   :  { %v1510_v53 = vmul.f32 0.03125, %v1506_v52 }
0x164b   :  { %v1509_v27 = vpop.xlane.xlu0 %1508 }
0x164c   :  { %v1512_v28 = vsub.f32 %v1500_v22, %v1510_v53  ;;  %v1511_v29 = vmul.f32 0.03125, %v1509_v27 }
0x164e   :  { %v1513_v30 = vsub.f32 %v1501_v23, %v1511_v29  ;;  %v1514_v31 = vmul.f32 %v1512_v28, %v1512_v28 }
0x1650   :  { %v1516_v32 = vsel %vm161_vm4, %v1514_v31, 0.0  ;;  %v1515_v33 = vmul.f32 %v1513_v30, %v1513_v30 }
0x1651   :  { %1517 = vadd.xlane.f32.xlu1 %v1516_v32 }
0x1652   :  { %v1519_v10 = vsel %vm161_vm4, %v1515_v33, 0.0 }
0x1653   :  { %1520 = vadd.xlane.f32.xlu0 %v1519_v10 }
0x1662   :  { %1621 = vrot.lane.b32.xlu1 %v2027_v34, %s2103_s0 }
0x1669   :  { %1619 = vrot.lane.b32.xlu0 %v2026_v11, %s2103_s0 }
0x16de   :  { %v1518_v35 = vpop.xlane.xlu1 %1517 }
0x16df   :  { %v1522_v36 = vmul.f32 0.03125, %v1518_v35 }
0x16e0   :  { %v1521_v37 = vpop.xlane.xlu0 %1520 }
0x16e1   :  { %v1524_v38 = vadd.f32 1e-12, %v1522_v36  ;;  %v1523_v39 = vmul.f32 0.03125, %v1521_v37 }
0x16e2   :  { %v1622_v59 = vpop.permute.xlu1 %1621 }
0x16e3   :  { %2092 = vrsqrt.f32 %v1524_v38  ;;  %v1525_v40 = vadd.f32 1e-12, %v1523_v39 }
0x16e4   :  { %v1620_v58 = vpop.permute.xlu0 %1619 }
0x16e5   :  { %2094 = vrsqrt.f32 %v1525_v40 }
0x16ed   :  { %v2093_v41 = vpop.eup %2092 }
0x16ee   :  { %v1528_v44 = vmul.f32 %v2093_v41, %v1512_v28 }
0x16ef   :  { %v2095_v45 = vpop.eup %2094 }
0x16f0   :  { %v1529_v47 = vmul.f32 %v2095_v45, %v1513_v30  ;;  %v1534_v48 = vmul.f32 %v1763_v46, %v1528_v44 }
0x16f2   :  { %v1535_v49 = vmul.f32 %v1763_v46, %v1529_v47  ;;  %v1540_v55 = vadd.f32 %v1764_v50, %v1534_v48 }
0x16f4   :  { %v1541_v54 = vadd.f32 %v1764_v50, %v1535_v49 }
0x16f6   :  { %v1543_v51 = vrot.slane %v1541_v54, 7 }
0x16f8   :  { %v1546_v56 = vsel %vm1545_vm12, %v1540_v55, %v1543_v51 }
0x16f9   :  { %v1551_v57 = vpack.c.bf16 %v1546_v56, %v1546_v56 }
0x16fb   :  { %1975 = vmatmul.mubr.msk.bf16.vlgmr.msra.gmra.mrb[36].mxu1 %vm161_vm4, %v1551_v57 }
0x16fc   :  { %1982 = vmatprep.mubr.msk.bf16.mxu1 %vm2100_vm0, %v2099_v2  ;;  %1979 = vmatpush3.bf16.msra.mxu1 %v1620_v58 }
0x16fd   :  { %1980 = vmatprep.subr.bf16.mxu1 %v2099_v2 }
0x1700   :  { %1981 = vmatpush3.bf16.msra.mxu1 %v1622_v59 }
0x17ce   :  { %v1606_v25 = vpop.f32.mrb[36].mxu1 }
0x17cf   :  { %v1607_v60 = vadd.f32 %v1765_v24, %v1606_v25  ;;  %v1976_v61 = vpop.f32.mrb[37].mxu1 }
0x17d0   :  { %v1609_v62 = vpop.f32.mrb[38].mxu1 }
0x17d1   :  { %2096 = vtanh.f32 %v1607_v60  ;;  %v1977_v63 = vpop.f32.mrb[39].mxu1 }
0x17db   :  { %v2097_v0 = vpop.eup %2096 }
0x17dc   :  { %v1613_v1 = vpack.c.bf16 %v2097_v0, %v2097_v0 }
0x17de   :  { %1983 = vmatmul.mubr.msk.bf16.vlgmr.msra.gmra.mrb[40].mxu1 %vm161_vm4, %v1613_v1 }
0x18b1   :  { %v1662_v2 = vpop.f32.mrb[40].mxu1 }
0x18b2   :  { %v1663_v5 = vadd.f32 %v1769_v4, %v1662_v2  ;;  %v1984_v3 = vpop.f32.mrb[41].mxu1 }
0x18b3   :  { %v1665_v6 = vpop.f32.mrb[42].mxu1 }
0x18b4   :  { %1669 = vrot.lane.b32.xlu1 %v1663_v5, %s2108_s11  ;;  %v1985_v7 = vpop.f32.mrb[43].mxu1 }
0x1926   :  { %v1670_v8 = vpop.permute.xlu1 %1669 }
0x1927   :  { %v1672_v42 = vsel %vm161_vm4, %v2097_v0, %v1670_v8 }
0x1928   :  { %1674 = vst.msk [vmem:[%s2547_s10] sm:$0x3] %vm1673_vm13, %v1672_v42 }

</bundles_post_ra>
